<compile_context>
chip_gen: v7x
topology: tpu7x:2x2x1
jax: 0.10.0
libtpu: 0.0.40
codegen_flags: <defaults>
</compile_context>

<pallas_src>
import functools

import jax
import jax.numpy as jnp
from jax.experimental import pallas as pl
from jax.experimental.pallas import tpu as pltpu

EPS = 1e-5


def _fused_resblock_kernel(
    x_ref, w1_ref, g1_ref, b1_ref, w2_ref, g2_ref, b2_ref,      # inputs
    o_ref,                                                       # output
    x_cache, s1_cache, s2_cache,                                 # VMEM caches
    sum1, sq1, sum2, sq2,                                        # BN stat accums
    scale1, shift1, scale2, shift2,                              # folded BN affines
    *, total_rows, block_rows, num_tiles, eps, compute_dtype):
    phase = pl.program_id(0)   # 0: fc1+stats1, 1: bn1+relu+fc2+stats2, 2: bn2+relu+residual
    tile = pl.program_id(1)

    row0 = tile * block_rows
    if block_rows % 8 == 0:
        row0 = pl.multiple_of(row0, block_rows)     # aligned dynamic-slice hint
    has_partial = (total_rows % block_rows) != 0
    inv_n = 1.0 / float(total_rows)

    def accum_stats(s, sum_ref, sq_ref):
        # Per-feature sum / sum-of-squares of this tile (sublane reduce -> XLU,
        # keeps the MXU slot free for the main matmuls).
        def add(v):
            sum_ref[...] += jnp.sum(v, axis=0, keepdims=True)
            sq_ref[...] += jnp.sum(v * v, axis=0, keepdims=True)

        if has_partial:
            # Padded rows of the last block hold unspecified data; jnp.where is
            # a select so NaN/Inf there cannot leak into the statistics, and
            # output writeback of the last block is clipped to `total_rows`.
            @pl.when(tile < num_tiles - 1)
            def _full():
                add(s)

            @pl.when(tile == num_tiles - 1)
            def _masked():
                row = row0 + jax.lax.broadcasted_iota(jnp.int32, s.shape, 0)
                add(jnp.where(row < total_rows, s, 0.0))
        else:
            add(s)   # static skip of iota/compare/select when B % tm == 0

    def fold_bn(sum_ref, sq_ref, g_ref, b_ref, scale_ref, shift_ref):
        mean = sum_ref[...] * inv_n
        # NOTE: E[x^2]-E[x]^2 in f32; clamped at 0 (see review precision note).
        var = jnp.maximum(sq_ref[...] * inv_n - mean * mean, 0.0)
        sc = g_ref[...] * jax.lax.rsqrt(var + eps)
        scale_ref[...] = sc
        shift_ref[...] = b_ref[...] - mean * sc

    # ---- phase 0: fc1, cache x & s1, accumulate BN1 stats -------------------
    @pl.when(jnp.logical_and(phase == 0, tile == 0))
    def _init_stats():
        for r in (sum1, sq1, sum2, sq2):
            r[...] = jnp.zeros_like(r)

    @pl.when(phase == 0)
    def _phase0():
        xv = x_ref[...]
        x_cache[pl.ds(row0, block_rows), :] = xv
        s1 = jnp.dot(xv.astype(compute_dtype), w1_ref[...].astype(compute_dtype),
                     preferred_element_type=jnp.float32)
        s1_cache[pl.ds(row0, block_rows), :] = s1
        accum_stats(s1, sum1, sq1)

    # ---- phase 1: bn1 + relu + fc2, cache s2, accumulate BN2 stats ----------
    @pl.when(jnp.logical_and(phase == 1, tile == 0))
    def _fold_bn1():
        fold_bn(sum1, sq1, g1_ref, b1_ref, scale1, shift1)

    @pl.when(phase == 1)
    def _phase1():
        s1 = s1_cache[pl.ds(row0, block_rows), :]
        h = jnp.maximum(s1 * scale1[...] + shift1[...], 0.0)
        s2 = jnp.dot(h.astype(compute_dtype), w2_ref[...].astype(compute_dtype),
                     preferred_element_type=jnp.float32)
        s2_cache[pl.ds(row0, block_rows), :] = s2
        accum_stats(s2, sum2, sq2)

    # ---- phase 2: bn2 + relu + residual, write output -----------------------
    @pl.when(jnp.logical_and(phase == 2, tile == 0))
    def _fold_bn2():
        fold_bn(sum2, sq2, g2_ref, b2_ref, scale2, shift2)

    @pl.when(phase == 2)
    def _phase2():
        s2 = s2_cache[pl.ds(row0, block_rows), :]
        y = jnp.maximum(s2 * scale2[...] + shift2[...], 0.0)
        xv = x_cache[pl.ds(row0, block_rows), :].astype(jnp.float32)
        o_ref[...] = (y + xv).astype(o_ref.dtype)


def _vmem_capacity_bytes():
    try:
        cap = getattr(pltpu.get_tpu_info(), "vmem_capacity_bytes", None)
        if cap:
            return int(cap)
    except Exception:
        pass
    return 64 * 1024 * 1024   # conservative (v7x per-TC physical VMEM)


def resblock_origin(x, params, *, tile_rows=512, compute_dtype=jnp.bfloat16):
    """x + relu(bn2(fc2(relu(bn1(fc1(x)))))) with training-mode BatchNorm."""
    # b1 / b2 intentionally unused in the kernel (cancelled by batch-stat BN).
    (w1, _b1, g1, be1, w2, _b2, g2, be2) = params
    B, Fin = x.shape
    H = w1.shape[1]
    Fout = w2.shape[1]
    assert Fin == Fout, "residual connection requires Fin == Fout"

    tm = B if B <= tile_rows else tile_rows
    if tm != B:
        tm = max(8, (tm // 8) * 8)        # (8,128) sublane constraint on blocks
    nt = pl.cdiv(B, tm)
    rows_padded = nt * tm

    # --- VMEM budgeting (per-generation; v7x has only 64 MiB physical) -------
    itemsize = jnp.dtype(x.dtype).itemsize
    cache_bytes = rows_padded * (Fin * itemsize + (H + Fout) * 4)
    resident_bytes = 2 * 4 * (Fin * H + H * Fout + 2 * H + 2 * Fout)
    tile_bytes = 2 * tm * (Fin + Fout) * itemsize
    needed = cache_bytes + resident_bytes + tile_bytes + (2 << 20)
    budget = _vmem_capacity_bytes() * 3 // 4
    if needed > budget:
        # TODO(synk): streaming per-layer two-pass fallback for huge batches.
        raise ValueError(
            f"batch too large for fused VMEM caches: need ~{needed >> 20} MiB, "
            f"budget ~{budget >> 20} MiB")
    vmem_limit = int(min(max(needed, 32 * 1024 * 1024), budget))

    # --- index maps -----------------------------------------------------------
    def x_map(p, i):          # stream x only during phase 0, then park
        return (jnp.where(p == 0, i, nt - 1), 0)

    def const_map(p, i):      # weights / gamma / beta stay VMEM-resident
        return (0, 0)

    def out_map(p, i):        # output blocks only move during phase 2
        return (jnp.where(p == 2, i, 0), 0)

    kernel = functools.partial(
        _fused_resblock_kernel,
        total_rows=B, block_rows=tm, num_tiles=nt, eps=EPS,
        compute_dtype=compute_dtype)

    return pl.pallas_call(
        kernel,
        out_shape=jax.ShapeDtypeStruct((B, Fout), x.dtype),
        grid_spec=pltpu.PrefetchScalarGridSpec(
            num_scalar_prefetch=0,
            grid=(3, nt),                                   # (phase, batch tile)
            in_specs=[
                pl.BlockSpec((tm, Fin), x_map),             # x
                pl.BlockSpec((Fin, H), const_map),          # w1
                pl.BlockSpec((1, H), const_map),            # gamma1
                pl.BlockSpec((1, H), const_map),            # beta1
                pl.BlockSpec((H, Fout), const_map),         # w2
                pl.BlockSpec((1, Fout), const_map),         # gamma2
                pl.BlockSpec((1, Fout), const_map),         # beta2
            ],
            out_specs=pl.BlockSpec((tm, Fout), out_map),
            scratch_shapes=[
                pltpu.VMEM((rows_padded, Fin), x.dtype),    # x cache (residual)
                pltpu.VMEM((rows_padded, H), jnp.float32),  # s1 cache
                pltpu.VMEM((rows_padded, Fout), jnp.float32),  # s2 cache
                pltpu.VMEM((1, H), jnp.float32),            # sum1
                pltpu.VMEM((1, H), jnp.float32),            # sq1
                pltpu.VMEM((1, Fout), jnp.float32),         # sum2
                pltpu.VMEM((1, Fout), jnp.float32),         # sq2
                pltpu.VMEM((1, H), jnp.float32),            # scale1
                pltpu.VMEM((1, H), jnp.float32),            # shift1
                pltpu.VMEM((1, Fout), jnp.float32),         # scale2
                pltpu.VMEM((1, Fout), jnp.float32),         # shift2
            ],
        ),
        compiler_params=pltpu.CompilerParams(
            # Phase axis is ordered; tile axis carries the stats reduction.
            dimension_semantics=("arbitrary", "arbitrary"),
            vmem_limit_bytes=vmem_limit,
        ),
    )(x, w1, g1, be1, w2, g2, be2)


def resblock_origin_ref(x, params):
    """Pure-JAX reference mirroring the PyTorch training-mode forward."""
    (w1, b1, g1, be1, w2, b2, g2, be2) = params
    h = x @ w1 + b1
    m1 = h.mean(0, keepdims=True)
    v1 = ((h - m1) ** 2).mean(0, keepdims=True)           # biased variance
    h = jnp.maximum(g1 * (h - m1) / jnp.sqrt(v1 + EPS) + be1, 0.0)
    y = h @ w2 + b2
    m2 = y.mean(0, keepdims=True)
    v2 = ((y - m2) ** 2).mean(0, keepdims=True)
    y = jnp.maximum(g2 * (y - m2) / jnp.sqrt(v2 + EPS) + be2, 0.0)
    return x + y


def init_params(key, Fin, Fout, n_neurons):
    k1, k2, k3, k4, k5, k6 = jax.random.split(key, 6)
    w1 = jax.random.normal(k1, (Fin, n_neurons), jnp.float32) / jnp.sqrt(Fin)
    b1 = jax.random.normal(k2, (1, n_neurons), jnp.float32) * 0.01
    w2 = jax.random.normal(k3, (n_neurons, Fout), jnp.float32) / jnp.sqrt(n_neurons)
    b2 = jax.random.normal(k4, (1, Fout), jnp.float32) * 0.01
    # Non-trivial gamma/beta so the BN fold is truly tested.
    g1 = 1.0 + 0.1 * jax.random.normal(k5, (1, n_neurons), jnp.float32)
    be1 = 0.1 * jax.random.normal(k6, (1, n_neurons), jnp.float32)
    g2 = 1.0 + 0.1 * jax.random.normal(k5, (1, Fout), jnp.float32)
    be2 = 0.1 * jax.random.normal(k6, (1, Fout), jnp.float32)
    return (w1, b1, g1, be1, w2, b2, g2, be2)


if __name__ == "__main__":
    B, Fin, Fout, H = 20, 128, 128, 256      # residual requires Fin == Fout
    key = jax.random.PRNGKey(0)
    kx, kp = jax.random.split(key)
    x = jax.random.normal(kx, (B, Fin), jnp.float32)
    params = init_params(kp, Fin, Fout, H)

    ref = resblock_origin_ref(x, params)

    # Strict-accuracy path: f32 MXU operands; tile_rows=8 forces 3 tiles with a
    # masked partial last tile so the multi-tile / masking machinery runs.
    out = jax.block_until_ready(
        resblock_origin(x, params, tile_rows=8, compute_dtype=jnp.float32))
    assert out.shape == (B, Fout)
    err = float(jnp.max(jnp.abs(out - ref)))
    assert jnp.allclose(out, ref, rtol=1e-4, atol=1e-4), \
        f"f32 path mismatch vs reference (max abs err {err})"

    # Default fast path: bf16 MXU operands (f32 accumulation / stats), 1 tile.
    out_bf16 = jax.block_until_ready(resblock_origin(x, params))
    err_bf = float(jnp.max(jnp.abs(out_bf16 - ref)))
    assert jnp.allclose(out_bf16, ref, rtol=5e-2, atol=2.5e-1), \
        f"bf16 path mismatch vs reference (max abs err {err_bf})"

    print("KERNEL_OK")
</pallas_src>

<mosaic_0001>
module attributes {stable_mosaic.version = 11 : i64} {
  func.func @_fused_resblock_kernel(%arg0: i32, %arg1: i32, %arg2: memref<8x128xf32, #tpu.memory_space<vmem>>, %arg3: memref<128x256xf32, #tpu.memory_space<vmem>>, %arg4: memref<1x256xf32, #tpu.memory_space<vmem>>, %arg5: memref<1x256xf32, #tpu.memory_space<vmem>>, %arg6: memref<256x128xf32, #tpu.memory_space<vmem>>, %arg7: memref<1x128xf32, #tpu.memory_space<vmem>>, %arg8: memref<1x128xf32, #tpu.memory_space<vmem>>, %arg9: memref<8x128xf32, #tpu.memory_space<vmem>>, %arg10: memref<24x128xf32, #tpu.memory_space<vmem>>, %arg11: memref<24x256xf32, #tpu.memory_space<vmem>>, %arg12: memref<24x128xf32, #tpu.memory_space<vmem>>, %arg13: memref<1x256xf32, #tpu.memory_space<vmem>>, %arg14: memref<1x256xf32, #tpu.memory_space<vmem>>, %arg15: memref<1x128xf32, #tpu.memory_space<vmem>>, %arg16: memref<1x128xf32, #tpu.memory_space<vmem>>, %arg17: memref<1x256xf32, #tpu.memory_space<vmem>>, %arg18: memref<1x256xf32, #tpu.memory_space<vmem>>, %arg19: memref<1x128xf32, #tpu.memory_space<vmem>>, %arg20: memref<1x128xf32, #tpu.memory_space<vmem>>) attributes {dimension_semantics = [#tpu.dimension_semantics<arbitrary>, #tpu.dimension_semantics<arbitrary>], iteration_bounds = array<i64: 3, 3>, scalar_prefetch = 0 : i64, scratch_operands = 11 : i64, tpu.core_type = #tpu.core_type<tc>, window_params = [{transform_indices = @transform_0, window_bounds = array<i64: 8, 128>}, {pipeline_mode = #tpu.pipeline_mode<synchronous>, transform_indices = @transform_1, window_bounds = array<i64: 128, 256>}, {pipeline_mode = #tpu.pipeline_mode<synchronous>, transform_indices = @transform_2, window_bounds = array<i64: 1, 256>}, {pipeline_mode = #tpu.pipeline_mode<synchronous>, transform_indices = @transform_3, window_bounds = array<i64: 1, 256>}, {pipeline_mode = #tpu.pipeline_mode<synchronous>, transform_indices = @transform_4, window_bounds = array<i64: 256, 128>}, {pipeline_mode = #tpu.pipeline_mode<synchronous>, transform_indices = @transform_5, window_bounds = array<i64: 1, 128>}, {pipeline_mode = #tpu.pipeline_mode<synchronous>, transform_indices = @transform_6, window_bounds = array<i64: 1, 128>}, {transform_indices = @transform_7, window_bounds = array<i64: 8, 128>}]} {
    %c8_i32 = arith.constant 8 : i32
    %0 = arith.muli %arg1, %c8_i32 : i32
    %1 = tpu.assume_multiple %0, 8 : i32
    %c0_i32 = arith.constant 0 : i32
    %2 = arith.cmpi eq, %arg0, %c0_i32 : i32
    %c0_i32_0 = arith.constant 0 : i32
    %3 = arith.cmpi eq, %arg1, %c0_i32_0 : i32
    %4 = arith.andi %2, %3 : i1
    %5 = arith.extui %4 : i1 to i32
    %c0_i32_1 = arith.constant 0 : i32
    %6 = arith.cmpi ne, %5, %c0_i32_1 : i32
    scf.if %6 {
      %cst = arith.constant 0.000000e+00 : f32
      %26 = vector.broadcast %cst : f32 to vector<1x256xf32>
      %c0 = arith.constant 0 : index
      %c0_12 = arith.constant 0 : index
      %27 = vector.load %arg13[%c0, %c0_12] : memref<1x256xf32, #tpu.memory_space<vmem>>, vector<1x256xf32>
      tpu.vector_store %arg13[%c0, %c0_12], %26 {strides = array<i32>} : memref<1x256xf32, #tpu.memory_space<vmem>>, vector<1x256xf32>,
      %cst_13 = arith.constant 0.000000e+00 : f32
      %28 = vector.broadcast %cst_13 : f32 to vector<1x256xf32>
      %c0_14 = arith.constant 0 : index
      %c0_15 = arith.constant 0 : index
      %29 = vector.load %arg14[%c0_14, %c0_15] : memref<1x256xf32, #tpu.memory_space<vmem>>, vector<1x256xf32>
      tpu.vector_store %arg14[%c0_14, %c0_15], %28 {strides = array<i32>} : memref<1x256xf32, #tpu.memory_space<vmem>>, vector<1x256xf32>,
      %cst_16 = arith.constant 0.000000e+00 : f32
      %30 = vector.broadcast %cst_16 : f32 to vector<1x128xf32>
      %c0_17 = arith.constant 0 : index
      %c0_18 = arith.constant 0 : index
      %31 = vector.load %arg15[%c0_17, %c0_18] : memref<1x128xf32, #tpu.memory_space<vmem>>, vector<1x128xf32>
      tpu.vector_store %arg15[%c0_17, %c0_18], %30 {strides = array<i32>} : memref<1x128xf32, #tpu.memory_space<vmem>>, vector<1x128xf32>,
      %cst_19 = arith.constant 0.000000e+00 : f32
      %32 = vector.broadcast %cst_19 : f32 to vector<1x128xf32>
      %c0_20 = arith.constant 0 : index
      %c0_21 = arith.constant 0 : index
      %33 = vector.load %arg16[%c0_20, %c0_21] : memref<1x128xf32, #tpu.memory_space<vmem>>, vector<1x128xf32>
      tpu.vector_store %arg16[%c0_20, %c0_21], %32 {strides = array<i32>} : memref<1x128xf32, #tpu.memory_space<vmem>>, vector<1x128xf32>,
    } else {
    }
    %c0_i32_2 = arith.constant 0 : i32
    %7 = arith.cmpi eq, %arg0, %c0_i32_2 : i32
    %8 = arith.extui %7 : i1 to i32
    %c0_i32_3 = arith.constant 0 : i32
    %9 = arith.cmpi ne, %8, %c0_i32_3 : i32
    scf.if %9 {
      %c0 = arith.constant 0 : index
      %c0_12 = arith.constant 0 : index
      %26 = vector.load %arg2[%c0, %c0_12] : memref<8x128xf32, #tpu.memory_space<vmem>>, vector<8x128xf32>
      %27 = arith.index_cast %1 : i32 to index
      %c0_13 = arith.constant 0 : index
      %28 = vector.load %arg10[%27, %c0_13] : memref<24x128xf32, #tpu.memory_space<vmem>>, vector<8x128xf32>
      tpu.vector_store %arg10[%27, %c0_13], %26 {strides = array<i32>} : memref<24x128xf32, #tpu.memory_space<vmem>>, vector<8x128xf32>,
      %c0_14 = arith.constant 0 : index
      %c0_15 = arith.constant 0 : index
      %29 = vector.load %arg3[%c0_14, %c0_15] : memref<128x256xf32, #tpu.memory_space<vmem>>, vector<128x256xf32>
      %cst = arith.constant dense<0.000000e+00> : vector<8x256xf32>
      %30 = tpu.matmul %26, %29, %cst {dimension_numbers = #tpu.dot_dimension_numbers<[1], [0], [0], [1], [0, 0, 1, 1], [], []>} : vector<8x128xf32>, vector<128x256xf32>, vector<8x256xf32> -> vector<8x256xf32>
      %31 = arith.index_cast %1 : i32 to index
      %c0_16 = arith.constant 0 : index
      %32 = vector.load %arg11[%31, %c0_16] : memref<24x256xf32, #tpu.memory_space<vmem>>, vector<8x256xf32>
      tpu.vector_store %arg11[%31, %c0_16], %30 {strides = array<i32>} : memref<24x256xf32, #tpu.memory_space<vmem>>, vector<8x256xf32>,
      %c2_i32_17 = arith.constant 2 : i32
      %33 = arith.cmpi slt, %arg1, %c2_i32_17 : i32
      %34 = arith.extui %33 : i1 to i32
      %c0_i32_18 = arith.constant 0 : i32
      %35 = arith.cmpi ne, %34, %c0_i32_18 : i32
      scf.if %35 {
        %c0_21 = arith.constant 0 : index
        %c0_22 = arith.constant 0 : index
        %39 = vector.load %arg13[%c0_21, %c0_22] : memref<1x256xf32, #tpu.memory_space<vmem>>, vector<1x256xf32>
        %cst_23 = arith.constant dense<0.000000e+00> : vector<256xf32>
        %40 = vector.multi_reduction <add>, %30, %cst_23 [0] : vector<8x256xf32> to vector<256xf32>
        %41 = vector.shape_cast %40 : vector<256xf32> to vector<1x256xf32>
        %42 = arith.addf %39, %41 : vector<1x256xf32>
        %c0_24 = arith.constant 0 : index
        %c0_25 = arith.constant 0 : index
        %43 = vector.load %arg13[%c0_24, %c0_25] : memref<1x256xf32, #tpu.memory_space<vmem>>, vector<1x256xf32>
        tpu.vector_store %arg13[%c0_24, %c0_25], %42 {strides = array<i32>} : memref<1x256xf32, #tpu.memory_space<vmem>>, vector<1x256xf32>,
        %c0_26 = arith.constant 0 : index
        %c0_27 = arith.constant 0 : index
        %44 = vector.load %arg14[%c0_26, %c0_27] : memref<1x256xf32, #tpu.memory_space<vmem>>, vector<1x256xf32>
        %45 = arith.mulf %30, %30 : vector<8x256xf32>
        %cst_28 = arith.constant dense<0.000000e+00> : vector<256xf32>
        %46 = vector.multi_reduction <add>, %45, %cst_28 [0] : vector<8x256xf32> to vector<256xf32>
        %47 = vector.shape_cast %46 : vector<256xf32> to vector<1x256xf32>
        %48 = arith.addf %44, %47 : vector<1x256xf32>
        %c0_29 = arith.constant 0 : index
        %c0_30 = arith.constant 0 : index
        %49 = vector.load %arg14[%c0_29, %c0_30] : memref<1x256xf32, #tpu.memory_space<vmem>>, vector<1x256xf32>
        tpu.vector_store %arg14[%c0_29, %c0_30], %48 {strides = array<i32>} : memref<1x256xf32, #tpu.memory_space<vmem>>, vector<1x256xf32>,
      } else {
      }
      %c2_i32_19 = arith.constant 2 : i32
      %36 = arith.cmpi eq, %arg1, %c2_i32_19 : i32
      %37 = arith.extui %36 : i1 to i32
      %c0_i32_20 = arith.constant 0 : i32
      %38 = arith.cmpi ne, %37, %c0_i32_20 : i32
      scf.if %38 {
        %39 = tpu.iota {dimensions = array<i32: 0>} : vector<8x256xi32>
        %40 = vector.broadcast %1 : i32 to vector<8x256xi32>
        %41 = arith.addi %40, %39 : vector<8x256xi32>
        %c20_i32 = arith.constant 20 : i32
        %42 = vector.broadcast %c20_i32 : i32 to vector<8x256xi32>
        %43 = arith.cmpi slt, %41, %42 : vector<8x256xi32>
        %cst_21 = arith.constant 0.000000e+00 : f32
        %44 = vector.broadcast %cst_21 : f32 to vector<8x256xf32>
        %45 = arith.select %43, %30, %44 : vector<8x256xi1>, vector<8x256xf32>
        %c0_22 = arith.constant 0 : index
        %c0_23 = arith.constant 0 : index
        %46 = vector.load %arg13[%c0_22, %c0_23] : memref<1x256xf32, #tpu.memory_space<vmem>>, vector<1x256xf32>
        %cst_24 = arith.constant dense<0.000000e+00> : vector<256xf32>
        %47 = vector.multi_reduction <add>, %45, %cst_24 [0] : vector<8x256xf32> to vector<256xf32>
        %48 = vector.shape_cast %47 : vector<256xf32> to vector<1x256xf32>
        %49 = arith.addf %46, %48 : vector<1x256xf32>
        %c0_25 = arith.constant 0 : index
        %c0_26 = arith.constant 0 : index
        %50 = vector.load %arg13[%c0_25, %c0_26] : memref<1x256xf32, #tpu.memory_space<vmem>>, vector<1x256xf32>
        tpu.vector_store %arg13[%c0_25, %c0_26], %49 {strides = array<i32>} : memref<1x256xf32, #tpu.memory_space<vmem>>, vector<1x256xf32>,
        %c0_27 = arith.constant 0 : index
        %c0_28 = arith.constant 0 : index
        %51 = vector.load %arg14[%c0_27, %c0_28] : memref<1x256xf32, #tpu.memory_space<vmem>>, vector<1x256xf32>
        %52 = arith.mulf %45, %45 : vector<8x256xf32>
        %cst_29 = arith.constant dense<0.000000e+00> : vector<256xf32>
        %53 = vector.multi_reduction <add>, %52, %cst_29 [0] : vector<8x256xf32> to vector<256xf32>
        %54 = vector.shape_cast %53 : vector<256xf32> to vector<1x256xf32>
        %55 = arith.addf %51, %54 : vector<1x256xf32>
        %c0_30 = arith.constant 0 : index
        %c0_31 = arith.constant 0 : index
        %56 = vector.load %arg14[%c0_30, %c0_31] : memref<1x256xf32, #tpu.memory_space<vmem>>, vector<1x256xf32>
        tpu.vector_store %arg14[%c0_30, %c0_31], %55 {strides = array<i32>} : memref<1x256xf32, #tpu.memory_space<vmem>>, vector<1x256xf32>,
      } else {
      }
    } else {
    }
    %c1_i32 = arith.constant 1 : i32
    %10 = arith.cmpi eq, %arg0, %c1_i32 : i32
    %c0_i32_4 = arith.constant 0 : i32
    %11 = arith.cmpi eq, %arg1, %c0_i32_4 : i32
    %12 = arith.andi %10, %11 : i1
    %13 = arith.extui %12 : i1 to i32
    %c0_i32_5 = arith.constant 0 : i32
    %14 = arith.cmpi ne, %13, %c0_i32_5 : i32
    scf.if %14 {
      %c0 = arith.constant 0 : index
      %c0_12 = arith.constant 0 : index
      %26 = vector.load %arg13[%c0, %c0_12] : memref<1x256xf32, #tpu.memory_space<vmem>>, vector<1x256xf32>
      %cst = arith.constant 5.000000e-02 : f32
      %27 = vector.broadcast %cst : f32 to vector<1x256xf32>
      %28 = arith.mulf %26, %27 : vector<1x256xf32>
      %c0_13 = arith.constant 0 : index
      %c0_14 = arith.constant 0 : index
      %29 = vector.load %arg14[%c0_13, %c0_14] : memref<1x256xf32, #tpu.memory_space<vmem>>, vector<1x256xf32>
      %cst_15 = arith.constant 5.000000e-02 : f32
      %30 = vector.broadcast %cst_15 : f32 to vector<1x256xf32>
      %31 = arith.mulf %29, %30 : vector<1x256xf32>
      %32 = arith.mulf %28, %28 : vector<1x256xf32>
      %33 = arith.subf %31, %32 : vector<1x256xf32>
      %cst_16 = arith.constant 0.000000e+00 : f32
      %34 = vector.broadcast %cst_16 : f32 to vector<1x256xf32>
      %35 = arith.maximumf %33, %34 : vector<1x256xf32>
      %c0_17 = arith.constant 0 : index
      %c0_18 = arith.constant 0 : index
      %36 = vector.load %arg4[%c0_17, %c0_18] : memref<1x256xf32, #tpu.memory_space<vmem>>, vector<1x256xf32>
      %cst_19 = arith.constant 9.99999974E-6 : f32
      %37 = vector.broadcast %cst_19 : f32 to vector<1x256xf32>
      %38 = arith.addf %35, %37 : vector<1x256xf32>
      %39 = math.rsqrt %38 : vector<1x256xf32>
      %40 = arith.mulf %36, %39 : vector<1x256xf32>
      %c0_20 = arith.constant 0 : index
      %c0_21 = arith.constant 0 : index
      %41 = vector.load %arg17[%c0_20, %c0_21] : memref<1x256xf32, #tpu.memory_space<vmem>>, vector<1x256xf32>
      tpu.vector_store %arg17[%c0_20, %c0_21], %40 {strides = array<i32>} : memref<1x256xf32, #tpu.memory_space<vmem>>, vector<1x256xf32>,
      %c0_22 = arith.constant 0 : index
      %c0_23 = arith.constant 0 : index
      %42 = vector.load %arg5[%c0_22, %c0_23] : memref<1x256xf32, #tpu.memory_space<vmem>>, vector<1x256xf32>
      %43 = arith.mulf %28, %40 : vector<1x256xf32>
      %44 = arith.subf %42, %43 : vector<1x256xf32>
      %c0_24 = arith.constant 0 : index
      %c0_25 = arith.constant 0 : index
      %45 = vector.load %arg18[%c0_24, %c0_25] : memref<1x256xf32, #tpu.memory_space<vmem>>, vector<1x256xf32>
      tpu.vector_store %arg18[%c0_24, %c0_25], %44 {strides = array<i32>} : memref<1x256xf32, #tpu.memory_space<vmem>>, vector<1x256xf32>,
    } else {
    }
    %c1_i32_6 = arith.constant 1 : i32
    %15 = arith.cmpi eq, %arg0, %c1_i32_6 : i32
    %16 = arith.extui %15 : i1 to i32
    %c0_i32_7 = arith.constant 0 : i32
    %17 = arith.cmpi ne, %16, %c0_i32_7 : i32
    scf.if %17 {
      %26 = arith.index_cast %1 : i32 to index
      %c0 = arith.constant 0 : index
      %27 = vector.load %arg11[%26, %c0] : memref<24x256xf32, #tpu.memory_space<vmem>>, vector<8x256xf32>
      %c0_12 = arith.constant 0 : index
      %c0_13 = arith.constant 0 : index
      %28 = vector.load %arg17[%c0_12, %c0_13] : memref<1x256xf32, #tpu.memory_space<vmem>>, vector<1x256xf32>
      %29 = vector.broadcast %28 : vector<1x256xf32> to vector<8x256xf32>
      %30 = arith.mulf %27, %29 : vector<8x256xf32>
      %c0_14 = arith.constant 0 : index
      %c0_15 = arith.constant 0 : index
      %31 = vector.load %arg18[%c0_14, %c0_15] : memref<1x256xf32, #tpu.memory_space<vmem>>, vector<1x256xf32>
      %32 = vector.broadcast %31 : vector<1x256xf32> to vector<8x256xf32>
      %33 = arith.addf %30, %32 : vector<8x256xf32>
      %cst = arith.constant 0.000000e+00 : f32
      %34 = vector.broadcast %cst : f32 to vector<8x256xf32>
      %35 = arith.maximumf %33, %34 : vector<8x256xf32>
      %c0_16 = arith.constant 0 : index
      %c0_17 = arith.constant 0 : index
      %36 = vector.load %arg6[%c0_16, %c0_17] : memref<256x128xf32, #tpu.memory_space<vmem>>, vector<256x128xf32>
      %cst_18 = arith.constant dense<0.000000e+00> : vector<8x128xf32>
      %37 = tpu.matmul %35, %36, %cst_18 {dimension_numbers = #tpu.dot_dimension_numbers<[1], [0], [0], [1], [0, 0, 1, 1], [], []>} : vector<8x256xf32>, vector<256x128xf32>, vector<8x128xf32> -> vector<8x128xf32>
      %38 = arith.index_cast %1 : i32 to index
      %c0_19 = arith.constant 0 : index
      %39 = vector.load %arg12[%38, %c0_19] : memref<24x128xf32, #tpu.memory_space<vmem>>, vector<8x128xf32>
      tpu.vector_store %arg12[%38, %c0_19], %37 {strides = array<i32>} : memref<24x128xf32, #tpu.memory_space<vmem>>, vector<8x128xf32>,
      %c2_i32_20 = arith.constant 2 : i32
      %40 = arith.cmpi slt, %arg1, %c2_i32_20 : i32
      %41 = arith.extui %40 : i1 to i32
      %c0_i32_21 = arith.constant 0 : i32
      %42 = arith.cmpi ne, %41, %c0_i32_21 : i32
      scf.if %42 {
        %c0_24 = arith.constant 0 : index
        %c0_25 = arith.constant 0 : index
        %46 = vector.load %arg15[%c0_24, %c0_25] : memref<1x128xf32, #tpu.memory_space<vmem>>, vector<1x128xf32>
        %cst_26 = arith.constant dense<0.000000e+00> : vector<128xf32>
        %47 = vector.multi_reduction <add>, %37, %cst_26 [0] : vector<8x128xf32> to vector<128xf32>
        %48 = vector.shape_cast %47 : vector<128xf32> to vector<1x128xf32>
        %49 = arith.addf %46, %48 : vector<1x128xf32>
        %c0_27 = arith.constant 0 : index
        %c0_28 = arith.constant 0 : index
        %50 = vector.load %arg15[%c0_27, %c0_28] : memref<1x128xf32, #tpu.memory_space<vmem>>, vector<1x128xf32>
        tpu.vector_store %arg15[%c0_27, %c0_28], %49 {strides = array<i32>} : memref<1x128xf32, #tpu.memory_space<vmem>>, vector<1x128xf32>,
        %c0_29 = arith.constant 0 : index
        %c0_30 = arith.constant 0 : index
        %51 = vector.load %arg16[%c0_29, %c0_30] : memref<1x128xf32, #tpu.memory_space<vmem>>, vector<1x128xf32>
        %52 = arith.mulf %37, %37 : vector<8x128xf32>
        %cst_31 = arith.constant dense<0.000000e+00> : vector<128xf32>
        %53 = vector.multi_reduction <add>, %52, %cst_31 [0] : vector<8x128xf32> to vector<128xf32>
        %54 = vector.shape_cast %53 : vector<128xf32> to vector<1x128xf32>
        %55 = arith.addf %51, %54 : vector<1x128xf32>
        %c0_32 = arith.constant 0 : index
        %c0_33 = arith.constant 0 : index
        %56 = vector.load %arg16[%c0_32, %c0_33] : memref<1x128xf32, #tpu.memory_space<vmem>>, vector<1x128xf32>
        tpu.vector_store %arg16[%c0_32, %c0_33], %55 {strides = array<i32>} : memref<1x128xf32, #tpu.memory_space<vmem>>, vector<1x128xf32>,
      } else {
      }
      %c2_i32_22 = arith.constant 2 : i32
      %43 = arith.cmpi eq, %arg1, %c2_i32_22 : i32
      %44 = arith.extui %43 : i1 to i32
      %c0_i32_23 = arith.constant 0 : i32
      %45 = arith.cmpi ne, %44, %c0_i32_23 : i32
      scf.if %45 {
        %46 = tpu.iota {dimensions = array<i32: 0>} : vector<8x128xi32>
        %47 = vector.broadcast %1 : i32 to vector<8x128xi32>
        %48 = arith.addi %47, %46 : vector<8x128xi32>
        %c20_i32 = arith.constant 20 : i32
        %49 = vector.broadcast %c20_i32 : i32 to vector<8x128xi32>
        %50 = arith.cmpi slt, %48, %49 : vector<8x128xi32>
        %cst_24 = arith.constant 0.000000e+00 : f32
        %51 = vector.broadcast %cst_24 : f32 to vector<8x128xf32>
        %52 = arith.select %50, %37, %51 : vector<8x128xi1>, vector<8x128xf32>
        %c0_25 = arith.constant 0 : index
        %c0_26 = arith.constant 0 : index
        %53 = vector.load %arg15[%c0_25, %c0_26] : memref<1x128xf32, #tpu.memory_space<vmem>>, vector<1x128xf32>
        %cst_27 = arith.constant dense<0.000000e+00> : vector<128xf32>
        %54 = vector.multi_reduction <add>, %52, %cst_27 [0] : vector<8x128xf32> to vector<128xf32>
        %55 = vector.shape_cast %54 : vector<128xf32> to vector<1x128xf32>
        %56 = arith.addf %53, %55 : vector<1x128xf32>
        %c0_28 = arith.constant 0 : index
        %c0_29 = arith.constant 0 : index
        %57 = vector.load %arg15[%c0_28, %c0_29] : memref<1x128xf32, #tpu.memory_space<vmem>>, vector<1x128xf32>
        tpu.vector_store %arg15[%c0_28, %c0_29], %56 {strides = array<i32>} : memref<1x128xf32, #tpu.memory_space<vmem>>, vector<1x128xf32>,
        %c0_30 = arith.constant 0 : index
        %c0_31 = arith.constant 0 : index
        %58 = vector.load %arg16[%c0_30, %c0_31] : memref<1x128xf32, #tpu.memory_space<vmem>>, vector<1x128xf32>
        %59 = arith.mulf %52, %52 : vector<8x128xf32>
        %cst_32 = arith.constant dense<0.000000e+00> : vector<128xf32>
        %60 = vector.multi_reduction <add>, %59, %cst_32 [0] : vector<8x128xf32> to vector<128xf32>
        %61 = vector.shape_cast %60 : vector<128xf32> to vector<1x128xf32>
        %62 = arith.addf %58, %61 : vector<1x128xf32>
        %c0_33 = arith.constant 0 : index
        %c0_34 = arith.constant 0 : index
        %63 = vector.load %arg16[%c0_33, %c0_34] : memref<1x128xf32, #tpu.memory_space<vmem>>, vector<1x128xf32>
        tpu.vector_store %arg16[%c0_33, %c0_34], %62 {strides = array<i32>} : memref<1x128xf32, #tpu.memory_space<vmem>>, vector<1x128xf32>,
      } else {
      }
    } else {
    }
    %c2_i32 = arith.constant 2 : i32
    %18 = arith.cmpi eq, %arg0, %c2_i32 : i32
    %c0_i32_8 = arith.constant 0 : i32
    %19 = arith.cmpi eq, %arg1, %c0_i32_8 : i32
    %20 = arith.andi %18, %19 : i1
    %21 = arith.extui %20 : i1 to i32
    %c0_i32_9 = arith.constant 0 : i32
    %22 = arith.cmpi ne, %21, %c0_i32_9 : i32
    scf.if %22 {
      %c0 = arith.constant 0 : index
      %c0_12 = arith.constant 0 : index
      %26 = vector.load %arg15[%c0, %c0_12] : memref<1x128xf32, #tpu.memory_space<vmem>>, vector<1x128xf32>
      %cst = arith.constant 5.000000e-02 : f32
      %27 = vector.broadcast %cst : f32 to vector<1x128xf32>
      %28 = arith.mulf %26, %27 : vector<1x128xf32>
      %c0_13 = arith.constant 0 : index
      %c0_14 = arith.constant 0 : index
      %29 = vector.load %arg16[%c0_13, %c0_14] : memref<1x128xf32, #tpu.memory_space<vmem>>, vector<1x128xf32>
      %cst_15 = arith.constant 5.000000e-02 : f32
      %30 = vector.broadcast %cst_15 : f32 to vector<1x128xf32>
      %31 = arith.mulf %29, %30 : vector<1x128xf32>
      %32 = arith.mulf %28, %28 : vector<1x128xf32>
      %33 = arith.subf %31, %32 : vector<1x128xf32>
      %cst_16 = arith.constant 0.000000e+00 : f32
      %34 = vector.broadcast %cst_16 : f32 to vector<1x128xf32>
      %35 = arith.maximumf %33, %34 : vector<1x128xf32>
      %c0_17 = arith.constant 0 : index
      %c0_18 = arith.constant 0 : index
      %36 = vector.load %arg7[%c0_17, %c0_18] : memref<1x128xf32, #tpu.memory_space<vmem>>, vector<1x128xf32>
      %cst_19 = arith.constant 9.99999974E-6 : f32
      %37 = vector.broadcast %cst_19 : f32 to vector<1x128xf32>
      %38 = arith.addf %35, %37 : vector<1x128xf32>
      %39 = math.rsqrt %38 : vector<1x128xf32>
      %40 = arith.mulf %36, %39 : vector<1x128xf32>
      %c0_20 = arith.constant 0 : index
      %c0_21 = arith.constant 0 : index
      %41 = vector.load %arg19[%c0_20, %c0_21] : memref<1x128xf32, #tpu.memory_space<vmem>>, vector<1x128xf32>
      tpu.vector_store %arg19[%c0_20, %c0_21], %40 {strides = array<i32>} : memref<1x128xf32, #tpu.memory_space<vmem>>, vector<1x128xf32>,
      %c0_22 = arith.constant 0 : index
      %c0_23 = arith.constant 0 : index
      %42 = vector.load %arg8[%c0_22, %c0_23] : memref<1x128xf32, #tpu.memory_space<vmem>>, vector<1x128xf32>
      %43 = arith.mulf %28, %40 : vector<1x128xf32>
      %44 = arith.subf %42, %43 : vector<1x128xf32>
      %c0_24 = arith.constant 0 : index
      %c0_25 = arith.constant 0 : index
      %45 = vector.load %arg20[%c0_24, %c0_25] : memref<1x128xf32, #tpu.memory_space<vmem>>, vector<1x128xf32>
      tpu.vector_store %arg20[%c0_24, %c0_25], %44 {strides = array<i32>} : memref<1x128xf32, #tpu.memory_space<vmem>>, vector<1x128xf32>,
    } else {
    }
    %c2_i32_10 = arith.constant 2 : i32
    %23 = arith.cmpi eq, %arg0, %c2_i32_10 : i32
    %24 = arith.extui %23 : i1 to i32
    %c0_i32_11 = arith.constant 0 : i32
    %25 = arith.cmpi ne, %24, %c0_i32_11 : i32
    scf.if %25 {
      %26 = arith.index_cast %1 : i32 to index
      %c0 = arith.constant 0 : index
      %27 = vector.load %arg12[%26, %c0] : memref<24x128xf32, #tpu.memory_space<vmem>>, vector<8x128xf32>
      %c0_12 = arith.constant 0 : index
      %c0_13 = arith.constant 0 : index
      %28 = vector.load %arg19[%c0_12, %c0_13] : memref<1x128xf32, #tpu.memory_space<vmem>>, vector<1x128xf32>
      %29 = vector.broadcast %28 : vector<1x128xf32> to vector<8x128xf32>
      %30 = arith.mulf %27, %29 : vector<8x128xf32>
      %c0_14 = arith.constant 0 : index
      %c0_15 = arith.constant 0 : index
      %31 = vector.load %arg20[%c0_14, %c0_15] : memref<1x128xf32, #tpu.memory_space<vmem>>, vector<1x128xf32>
      %32 = vector.broadcast %31 : vector<1x128xf32> to vector<8x128xf32>
      %33 = arith.addf %30, %32 : vector<8x128xf32>
      %cst = arith.constant 0.000000e+00 : f32
      %34 = vector.broadcast %cst : f32 to vector<8x128xf32>
      %35 = arith.maximumf %33, %34 : vector<8x128xf32>
      %36 = arith.index_cast %1 : i32 to index
      %c0_16 = arith.constant 0 : index
      %37 = vector.load %arg10[%36, %c0_16] : memref<24x128xf32, #tpu.memory_space<vmem>>, vector<8x128xf32>
      %38 = arith.addf %35, %37 : vector<8x128xf32>
      %c0_17 = arith.constant 0 : index
      %c0_18 = arith.constant 0 : index
      %39 = vector.load %arg9[%c0_17, %c0_18] : memref<8x128xf32, #tpu.memory_space<vmem>>, vector<8x128xf32>
      tpu.vector_store %arg9[%c0_17, %c0_18], %38 {strides = array<i32>} : memref<8x128xf32, #tpu.memory_space<vmem>>, vector<8x128xf32>,
    } else {
    }
    return
  }
  func.func @transform_0(%arg0: i32, %arg1: i32) -> (i32, i32) {
    %c0_i32 = arith.constant 0 : i32
    %0 = arith.cmpi eq, %arg0, %c0_i32 : i32
    %c2_i32 = arith.constant 2 : i32
    %1 = arith.select %0, %arg1, %c2_i32 : i32
    %c0_i32_0 = arith.constant 0 : i32
    %c0_i32_1 = arith.constant 0 : i32
    return %1, %c0_i32_0 : i32, i32
  }
  func.func @transform_1(%arg0: i32, %arg1: i32) -> (i32, i32) {
    %c0_i32 = arith.constant 0 : i32
    %c0_i32_0 = arith.constant 0 : i32
    %c0_i32_1 = arith.constant 0 : i32
    return %c0_i32, %c0_i32_0 : i32, i32
  }
  func.func @transform_2(%arg0: i32, %arg1: i32) -> (i32, i32) {
    %c0_i32 = arith.constant 0 : i32
    %c0_i32_0 = arith.constant 0 : i32
    %c0_i32_1 = arith.constant 0 : i32
    return %c0_i32, %c0_i32_0 : i32, i32
  }
  func.func @transform_3(%arg0: i32, %arg1: i32) -> (i32, i32) {
    %c0_i32 = arith.constant 0 : i32
    %c0_i32_0 = arith.constant 0 : i32
    %c0_i32_1 = arith.constant 0 : i32
    return %c0_i32, %c0_i32_0 : i32, i32
  }
  func.func @transform_4(%arg0: i32, %arg1: i32) -> (i32, i32) {
    %c0_i32 = arith.constant 0 : i32
    %c0_i32_0 = arith.constant 0 : i32
    %c0_i32_1 = arith.constant 0 : i32
    return %c0_i32, %c0_i32_0 : i32, i32
  }
  func.func @transform_5(%arg0: i32, %arg1: i32) -> (i32, i32) {
    %c0_i32 = arith.constant 0 : i32
    %c0_i32_0 = arith.constant 0 : i32
    %c0_i32_1 = arith.constant 0 : i32
    return %c0_i32, %c0_i32_0 : i32, i32
  }
  func.func @transform_6(%arg0: i32, %arg1: i32) -> (i32, i32) {
    %c0_i32 = arith.constant 0 : i32
    %c0_i32_0 = arith.constant 0 : i32
    %c0_i32_1 = arith.constant 0 : i32
    return %c0_i32, %c0_i32_0 : i32, i32
  }
  func.func @transform_7(%arg0: i32, %arg1: i32) -> (i32, i32) {
    %c2_i32 = arith.constant 2 : i32
    %0 = arith.cmpi eq, %arg0, %c2_i32 : i32
    %c0_i32 = arith.constant 0 : i32
    %1 = arith.select %0, %arg1, %c0_i32 : i32
    %c0_i32_0 = arith.constant 0 : i32
    %c0_i32_1 = arith.constant 0 : i32
    return %1, %c0_i32_0 : i32, i32
  }
}

</mosaic_0001>

<bundles_post_ra>
// kernel: tpu_custom_call.1
= control target key start
LH: loop header
LB: loop body
LE: loop exit
PB: predicated region body
PF: predicated region fallthrough
CT: control target
= control target key end

     0   :  { %s1920_s0 = inlined_call_operand.hbm [shape: f32[20,128], index: 0, kind: input, shape index: {}]   ;;  %s1921_s1 = inlined_call_operand.hbm [shape: f32[128,256], index: 1, kind: input, shape index: {}]   ;;  %s1922_s2 = inlined_call_operand.vmem [shape: f32[1,256], index: 2, kind: input, shape index: {}]   ;;  %s1923_s3 = inlined_call_operand.vmem [shape: f32[1,256], index: 3, kind: input, shape index: {}]   ;;  %s1924_s4 = inlined_call_operand.hbm [shape: f32[256,128], index: 4, kind: input, shape index: {}]   ;;  %s1925_s5 = inlined_call_operand.vmem [shape: f32[1,128], index: 5, kind: input, shape index: {}]   ;;  %s1926_s6 = inlined_call_operand.vmem [shape: f32[1,128], index: 6, kind: input, shape index: {}]   ;;  %s1927_s7 = inlined_call_operand.hbm [shape: f32[20,128], index: 7, kind: output, shape index: {}]  }
   0x1   :  { %1940 = sst [smem:[#allocation28_spill]] %s1921_s1 }
   0x2   :  { %1941 = sst [smem:[#allocation29_spill]] %s1923_s3 }
   0x3   :  { %1942 = sst [smem:[#allocation30_spill]] %s1924_s4 }
   0x4   :  { %1943 = sst [smem:[#allocation31_spill]] %s1925_s5 }
   0x5   :  { %1944 = sst [smem:[#allocation32_spill]] %s1926_s6 }
   0x6   :  { %1945 = sst [smem:[#allocation33_spill]] %s1927_s7 }
   0x7   :  { %12 = vsyncpa [#allocation14], 0 }
   0x8   :  { %14 = vsyncpa [#allocation14 + $0x1], 0 }
   0x9   :  { %15 = vsyncpa [#allocation17], 0 }
   0xa   :  { %16 = vsyncpa [#allocation15], 0 }
   0xb   :  { %18 = vsyncpa [#allocation15 + $0x1], 0  ;;  %s1568_s24 = smov 0   ;;  %s1570_s25 = smov 0  }
   0xc   :  { %s1572_s26 = smov 0   ;;  %s1574_s27 = smov 0  }
   0xd   :  { %s1576_s28 = smov 0   ;;  %s1578_s29 = smov 0  }
   0xe   :  { %s1580_s30 = smov 0   ;;  %s1582_s8 = smov 0  }
   0xf   :  { %s1584_s9 = smov 0   ;;  %s1586_s10 = smov 0  }
  0x10   :  { %s1588_s11 = smov 0  }
  0x11 LB: > { %1946 = sst [smem:[#allocation23_spill]] %s1474_s24  ;;  %s1035_s12 = sadd.s32 4294967295, %s1514_s11   ;;  %s1514_s11 = sphi %s1588_s11, %s24_s11   ;;  %s1510_s10 = sphi %s1586_s10, %s1975_s10   ;;  %s1506_s9 = sphi %s1584_s9, %s1983_s9   ;;  %s1502_s8 = sphi %s1582_s8, %s1973_s8   ;;  %s1498_s30 = sphi %s1580_s30, %s1982_s30   ;;  %s1494_s29 = sphi %s1578_s29, %s1981_s29   ;;  %s1490_s28 = sphi %s1576_s28, %s1980_s28   ;;  %s1486_s27 = sphi %s1574_s27, %s1979_s27   ;;  %s1482_s26 = sphi %s1572_s26, %s1978_s26   ;;  %s1478_s25 = sphi %s1570_s25, %s1977_s25   ;;  %s1474_s24 = sphi %s1568_s24, %s1976_s24  }
  0x12   : > { %1947 = sst [smem:[#allocation24_spill]] %s1510_s10  ;;  %s1036_s13 = sadd.s32 4294967294, %s1514_s11  }
  0x13   : > { %p60_p0 = scmp.ne.s32.totalorder %s1490_s28, %s1486_s27  ;;  %p1624_p1 = scmp.eq.s32.totalorder %s1035_s12, 0 }
  0x14   : > { %p213_p2 = scmp.ne.s32.totalorder %s1482_s26, %s1478_s25  ;;  %p214_p3 = scmp.eq.s32.totalorder %s1035_s12, 8 }
  0x15   : > { %s1948_s14 = scalar_select %p1624_p1, 1, 0 }
  0x16   : > { %p1632_p4 = por %p1624_p1, %p60_p0  ;;  %p219_p5 = scmp.ne.s32.totalorder %s1478_s25, %s1474_s24 }
  0x17   : > { %p1638_p6 = por %p214_p3, %p213_p2  ;;  %p220_p7 = scmp.eq.s32.totalorder %s1036_s13, 8 }
  0x18   : > { %s1949_s15 = scalar_select %p1632_p4, 1, 0 }
  0x19   : > { %s1950_s16 = scalar_select %p1638_p6, 1, 0 }
  0x1a   : > { %p1037_p8 = scmp.ge.s32.totalorder %s1514_s11, 1  ;;  %p227_p9 = scmp.lt.s32.totalorder %s1514_s11, 10 }
  0x1b   : > { %1951 = sst [smem:[#allocation25_spill]] %s1950_s16  ;;  %p1644_p10 = por %p220_p7, %p219_p5 }
  0x1c   : > { %p1648_p11 = pnand %p1037_p8, %p227_p9  ;;  %s1516_s19 = smov [#allocation16]  }
  0x1d   : > { %s1952_s17 = scalar_select %p1644_p10, 1, 0 }
  0x1e   : > { %s1954_s18 = scalar_select %p1648_p11, 1, 0 }
  0x1f   : > { %1953 = sst [smem:[#allocation26_spill]] %s1952_s17  ;;  %s239_s20 = sshll.u32 %s1516_s19, 4  ;;  %s240_s20 = int_to_ptr.vmem [resolvable:$true] %s239_s20 }
  0x20   : > { %p1179_p12 = pneg %p1648_p11  ;;  %s1517_s22 = smov [#allocation18]  }
  0x21   : > { %s258_s23 = sshll.u32 %s1517_s22, 4  ;;  %s1956_s1 = sld [smem:[#allocation28_spill]]  ;;  %s1660_s23 = int_to_ptr.vmem [resolvable:$true] %s258_s23 }
  0x22   : > { %p1656_p13 = pnand %p1179_p12, %p1624_p1 }
  0x24   : > { %p1304_p2 = pneg %p1656_p13 }
  0x27   : > { %s1302_s13 = scalar_lea.hbm %s1956_s1, 4096 }
  0x28   : > { %p1303_p0 = scmp.ne.s32.totalorder %s1956_s1, %s1302_s13  ;;  %p1309_p7 = scmp.lt.u32.totalorder %s1302_s13, %s1956_s1 }
  0x2a   : > { %p1305_p3 = pnand %p1304_p2, %p1303_p0 }
  0x2c   : > { %p1306_p5 = pneg %p1305_p3 }
  0x2e   : > { %p1311_p8 = pnand %p1309_p7, %p1306_p5 }
  0x30   : > { %1314 = shalt.err (!%p1311_p8)
}
  0x31   : > { %s1315_s22 = scalar_lea.vmem %s240_s20, 4096  ;;  %p1323_p6 = scmp.lt.s32.totalorder %s240_s20, %s240_s20 }
  0x32   : > { %p1316_p9 = scmp.ne.s32.totalorder %s240_s20, %s1315_s22  ;;  %p1324_p1 = scmp.lt.s32.totalorder %s1315_s22, %s1315_s22 }
  0x34   : > { %p1318_p12 = pnand %p1316_p9, %p1304_p2  ;;  %p1325_p4 = por %p1324_p1, %p1323_p6 }
  0x36   : > { %p1319_p10 = pneg %p1318_p12 }
  0x38   : > { %p1326_p11 = pnand %p1325_p4, %p1319_p10 }
  0x3a   : > { %1329 = shalt.err (!%p1326_p11)
}
  0x3b   : > { %s1518_s17 = smov 256   ;;  %s1519_s27 = smov 16  }
  0x3c   : > { %1182 = dma.hbm_to_vmem [thread:$0]  (!%p1656_p13), %s1956_s1, 4096, %s240_s20, [#allocation17], %s1518_s17, %s1518_s17, %s1519_s27  }
  0x3d   : > { %s1957_s4 = sld [smem:[#allocation30_spill]] }
  0x43   : > { %s1330_s19 = scalar_lea.hbm %s1957_s4, 4096 }
  0x44   : > { %p1331_p0 = scmp.ne.s32.totalorder %s1957_s4, %s1330_s19  ;;  %p1337_p6 = scmp.lt.u32.totalorder %s1330_s19, %s1957_s4 }
  0x46   : > { %p1333_p1 = pnand %p1331_p0, %p1304_p2 }
  0x48   : > { %p1334_p4 = pneg %p1333_p1 }
  0x4a   : > { %p1339_p10 = pnand %p1337_p6, %p1334_p4 }
  0x4c   : > { %1342 = shalt.err (!%p1339_p10)
}
  0x4d   : > { %s1343_s20 = scalar_lea.vmem %s1660_s23, 4096  ;;  %p1351_p7 = scmp.lt.s32.totalorder %s1660_s23, %s1660_s23 }
  0x4e   : > { %p1344_p11 = scmp.ne.s32.totalorder %s1660_s23, %s1343_s20  ;;  %p1352_p8 = scmp.lt.s32.totalorder %s1343_s20, %s1343_s20 }
  0x50   : > { %p1346_p3 = pnand %p1344_p11, %p1304_p2  ;;  %p1353_p9 = por %p1352_p8, %p1351_p7 }
  0x52   : > { %p1347_p5 = pneg %p1346_p3 }
  0x54   : > { %p1354_p12 = pnand %p1353_p9, %p1347_p5 }
  0x56   : > { %1357 = shalt.err (!%p1354_p12)
}
  0x57   : > { %s1520_s5 = smov 128   ;;  %s1521_s6 = smov 8  }
  0x58   : > { %1185 = dma.hbm_to_vmem [thread:$0]  (!%p1656_p13), %s1957_s4, 4096, %s1660_s23, [#allocation17], %s1520_s5, %s1520_s5, %s1521_s6  }
  0x59   : > { %s33_s27 = sadd.s32 1, %s1506_s9  ;;  %s36_s7 = sadd.s32 1, %s1510_s10 }
  0x5a   : > { %p34_p2 = scmp.ge.s32.totalorder %s33_s27, 3  ;;  %p40_p0 = scmp.eq.s32.totalorder %s1510_s10, 0 }
  0x5b   : > { %s47_s24 = sadd.s32 1, %s1494_s29  ;;  %p54_p4 = scmp.ne.s32.totalorder %s1494_s29, %s1490_s28 }
  0x5c   : > { %s1985_s27 = smov (%p34_p2, %s33_s27), 0  ;;  %s1987_s7 = smov (!%p34_p2, %s36_s7), %s1510_s10 }
  0x5d   : > { %s41_s12 = scalar_select %p40_p0, %s1506_s9, 2 }
  0x5e   : > { %p38_p1 = scmp.ge.s32.totalorder %s1987_s7, 3  ;;  %p55_p6 = scmp.eq.s32.totalorder %s1514_s11, 0 }
  0x5f   : > { %p196_p10 = scmp.eq.s32.totalorder %s1510_s10, 2  ;;  %s203_s23 = sadd.s32 1, %s1482_s26 }
  0x60   : > { %s1989_s7 = smov (%p38_p1, %s1987_s7), 0  ;;  %p1723_p13 = por %p55_p6, %p54_p4 }
  0x61   : > { %1958 = sst [smem:[#allocation27_spill]] %s1989_s7  ;;  %p42_p11 = scmp.eq.s32.totalorder %s1989_s7, 0 }
  0x62   : > { %p198_p3 = scmp.eq.s32.totalorder %s1989_s7, 2  ;;  %p1196_p5 = scmp.lt.s32.totalorder %s1514_s11, 9 }
  0x63   : > { %s197_s13 = scalar_select %p196_p10, %s1506_s9, 0 }
  0x64   : > { %s43_s19 = scalar_select %p42_p11, %s1985_s27, 2 }
  0x65   : > { %s199_s22 = scalar_select %p198_p3, %s1985_s27, 0 }
  0x66   : > { %s44_s20 = ssub.s32 %s41_s12, %s43_s19  ;;  %s278_s6 = sand.u32 1, %s1494_s29  }
  0x67   : > { %p45_p7 = scmp.eq.s32.totalorder %s44_s20, 0  ;;  %s200_s5 = ssub.s32 %s197_s13, %s199_s22 }
  0x68   : > { %p201_p8 = scmp.eq.s32.totalorder %s200_s5, 0  ;;  %s1041_s1 = sshll.u32 %s278_s6, 3 }
  0x69   : > { %s1736_s16 = scalar_select %p45_p7, %s1494_s29, %s47_s24  }
  0x6a   : > { %s1739_s17 = scalar_select %p201_p8, %s1482_s26, %s203_s23  }
  0x6b   : > { %s1042_s4 = sshll.u32 %s41_s12, 7  ;;  %s282_s19 = scalar_lea.vmem [#allocation13], %s1041_s1 }
  0x6c   : > { %s1744_s7 = scalar_lea.hbm %s1920_s0, %s1042_s4  ;;  %s291_s20 = sshll.u32 %s282_s19, 4  ;;  %s1746_s20 = int_to_ptr.vmem [resolvable:$true] %s291_s20 }
  0x6d   : > { %p1752_p9 = pnand %p1196_p5, %p1723_p13  ;;  %s279_s12 = scalar_lea.sflag [#allocation14], %s278_s6 }
  0x6e   : > { %s1358_s3 = scalar_lea.hbm %s1744_s7, 128  ;;  %s1363_s10 = scalar_lea.hbm %s1920_s0, 384 }
  0x6f   : > { %p1359_p12 = scmp.ne.s32.totalorder %s1744_s7, %s1358_s3  ;;  %p1360_p2 = pneg %p1752_p9 }
  0x70   : > { %p1364_p4 = scmp.lt.u32.totalorder %s1744_s7, %s1920_s0  ;;  %p1365_p6 = scmp.lt.u32.totalorder %s1363_s10, %s1358_s3 }
  0x71   : > { %p1361_p0 = pnand %p1360_p2, %p1359_p12  ;;  %p1367_p13 = scmp.lt.u32.totalorder %s1358_s3, %s1744_s7 }
  0x72   : > { %p1366_p10 = por %p1365_p6, %p1364_p4 }
  0x73   : > { %p1362_p1 = pneg %p1361_p0 }
  0x74   : > { %p1368_p11 = por %p1367_p13, %p1366_p10 }
  0x76   : > { %p1369_p3 = pnand %p1368_p11, %p1362_p1 }
  0x78   : > { %1372 = shalt.err (!%p1369_p3)
}
  0x79   : > { %s1373_s13 = scalar_lea.vmem %s1746_s20, 128  ;;  %s1522_s22 = smov [#allocation13]  }
  0x7a   : > { %p1374_p5 = scmp.ne.s32.totalorder %s1746_s20, %s1373_s13  ;;  %s1378_s5 = sshll.u32 %s1522_s22, 4  ;;  %s1379_s5 = int_to_ptr.vmem [resolvable:$false] %s1378_s5 }
  0x7b   : > { %s1380_s6 = scalar_lea.vmem %s1379_s5, 256  ;;  %p1381_p12 = scmp.lt.s32.totalorder %s1746_s20, %s1379_s5 }
  0x7c   : > { %p1376_p7 = pnand %p1374_p5, %p1360_p2  ;;  %p1382_p0 = scmp.lt.s32.totalorder %s1380_s6, %s1373_s13 }
  0x7e   : > { %p1377_p8 = pneg %p1376_p7  ;;  %p1383_p4 = por %p1382_p0, %p1381_p12 }
  0x80   : > { %p1384_p6 = pnand %p1383_p4, %p1377_p8 }
  0x82   : > { %1387 = shalt.err (!%p1384_p6)
}
  0x83   : > { %1189 = dma.hbm_to_vmem [thread:$0]  (!%p1752_p9), %s1744_s7, 128, %s1746_s20, %s279_s12  }
  0x84   : > { %p1961_p1 = scmp.ne.s32.totalorder %s1954_s18, 0 }
  0x85   : > { %s302_s19 = sand.u32 (!%p1961_p1), 1, %s1490_s28   ;;  %p1962_p2 = scmp.ne.s32.totalorder (!%p1961_p1), %s1949_s15, 0 }
  0x86   : > { %300 = sbr.rel (%p1961_p1) target bundleno = 860 (0x35c), region = 48  ;;  %s1784_s3 = sshll.u32 (!%p1961_p1), %s302_s19, 3 }
  0x87   : > { %s303_s1 = scalar_lea.sflag (!%p1961_p1), [#allocation14], %s302_s19  ;;  %s306_s4 = scalar_lea.vmem (!%p1961_p1), [#allocation13], %s1784_s3 }
  0x8d   : > { %1461 = dma.done.wait (%p1962_p2), %s303_s1, 128  }
  0x8e   : > { %1463 = vsyncadd (%p1962_p2), %s303_s1, 4294967168  ;;  %p1963_p10 = scmp.ne.s32.totalorder %s1948_s14, 0 }
  0x90   : > { %1465 = dma.done.wait (%p1963_p10), [#allocation17], 8192  }
  0x91   : > { %1467 = vsyncadd (%p1963_p10), [#allocation17], 4294959104  ;;  %s342_s18 = sand.u32 1, %s1478_s25   ;;  %s1797_s7 = sshll.u32 %s1498_s30, 3 }
  0x92   : > { %s1801_s20 = sshll.u32 %s342_s18, 3  ;;  %p350_p9 = scmp.eq.s32.totalorder %s1502_s8, 0 }
  0x93   : > { %p351_p13 = scmp.eq.s32.totalorder %s1498_s30, 0  ;;  %s344_s15 = scalar_lea.vmem [#allocation19], %s1801_s20 }
  0x95   : > { %p352_p11 = pnand %p351_p13, %p350_p9 }
  0x96   : > { %v356_v0 = vlaneseq (!%p352_p11)  ;;  %v1523_v1 = vmov (!%p352_p11), 0.0  }
  0x97   : > { %355 = sbr.rel (%p352_p11) target bundleno = 158 (0x9e), region = 64  ;;  %362 = vst [vmem:[#allocation7] sm:$0x1] (!%p352_p11), %v1523_v1  ;;  %363 = vst [vmem:[#allocation8] sm:$0x1] (!%p352_p11), %v1523_v1 }
  0x98   : > { %vm358_vm0 = vcmp.lt.s32.totalorder (!%p352_p11), %v356_v0, 256 }
  0x99   : > { %360 = vst.msk [vmem:[#allocation5] sm:$0x3] (!%p352_p11), %vm358_vm0, %v1523_v1  ;;  %361 = vst.msk [vmem:[#allocation6] sm:$0x3] (!%p352_p11), %vm358_vm0, %v1523_v1 }
  0x9e PF: > { %p1049_p3 = scmp.ne.s32.totalorder %s1502_s8, 0 }
  0x9f   : > { %v371_v2 = vld [vmem:[#allocation16 + $0x8] sm:$0xff] (!%p1049_p3)  ;;  %v373_v3 = vld [vmem:[#allocation16 + $0x18] sm:$0xff] (!%p1049_p3)  ;;  %v370_v4 = vld [vmem:[#allocation16] sm:$0xff] (!%p1049_p3)  ;;  %v1524_v9 = vmov (!%p1049_p3), 0.0   ;;  %s368_s14 = scalar_lea.vmem (!%p1049_p3), [#allocation2], %s1797_s7  ;;  %s473_s24 = sshra.s32 (!%p1049_p3), %s1797_s7, 3 }
  0xa0   : > { %366 = sbr.rel (%p1049_p3) target bundleno = 462 (0x1ce), region = 68  ;;  %v1103_v5 = vpack.c.bf16 (!%p1049_p3), %v373_v3, %v371_v2  ;;  %v372_v6 = vld [vmem:[#allocation16 + $0x10] sm:$0xff] (!%p1049_p3)  ;;  %v375_v7 = vld [vmem:[#allocation16 + $0x28] sm:$0xff] (!%p1049_p3)  ;;  %v377_v8 = vld [vmem:[#allocation16 + $0x38] sm:$0xff] (!%p1049_p3)  ;;  %466 = vmatprep.mubr.f32.mxu0 (!%p1049_p3), %v1524_v9  ;;  %s1066_s12 = sshll.u32 (!%p1049_p3), %s473_s24, 4 }
  0xa1   : > { %v1105_v10 = vpack.c.bf16 (!%p1049_p3), %v372_v6, %v370_v4  ;;  %v1107_v11 = vpack.c.bf16 (!%p1049_p3), %v377_v8, %v375_v7  ;;  %v374_v12 = vld [vmem:[#allocation16 + $0x20] sm:$0xff] (!%p1049_p3)  ;;  %v376_v13 = vld [vmem:[#allocation16 + $0x30] sm:$0xff] (!%p1049_p3)  ;;  %v379_v14 = vld [vmem:[#allocation16 + $0x48] sm:$0xff] (!%p1049_p3)  ;;  %s477_s10 = scalar_lea.vmem (!%p1049_p3), [#allocation3], %s1066_s12  ;;  %p1052_p5 = scmp.ge.s32.totalorder (!%p1049_p3), %s1498_s30, 2 }
  0xa2   : > { %1104 = vmatprep.subr.bf16.mxu0 (!%p1049_p3), %v1103_v5  ;;  %v381_v15 = vld [vmem:[#allocation16 + $0x58] sm:$0xff] (!%p1049_p3)  ;;  %v1109_v16 = vpack.c.bf16 (!%p1049_p3), %v376_v13, %v374_v12  ;;  %v378_v18 = vld [vmem:[#allocation16 + $0x40] sm:$0xff] (!%p1049_p3)  ;;  %v380_v19 = vld [vmem:[#allocation16 + $0x50] sm:$0xff] (!%p1049_p3) }
  0xa3   : > { %1106 = vmatpush1.bf16.msra.mxu0 (!%p1049_p3), %v1105_v10  ;;  %v1111_v17 = vpack.c.bf16 (!%p1049_p3), %v381_v15, %v379_v14  ;;  %v383_v20 = vld [vmem:[#allocation16 + $0x68] sm:$0xff] (!%p1049_p3)  ;;  %v385_v21 = vld [vmem:[#allocation16 + $0x78] sm:$0xff] (!%p1049_p3)  ;;  %v1113_v22 = vpack.c.bf16 (!%p1049_p3), %v380_v19, %v378_v18  ;;  %v382_v24 = vld [vmem:[#allocation16 + $0x60] sm:$0xff] (!%p1049_p3) }
  0xa4   : > { %1108 = vmatprep.subr.bf16.mxu0 (!%p1049_p3), %v1107_v11  ;;  %v1115_v23 = vpack.c.bf16 (!%p1049_p3), %v385_v21, %v383_v20  ;;  %v384_v25 = vld [vmem:[#allocation16 + $0x70] sm:$0xff] (!%p1049_p3)  ;;  %v387_v26 = vld [vmem:[#allocation16 + $0x88] sm:$0xff] (!%p1049_p3)  ;;  %v389_v27 = vld [vmem:[#allocation16 + $0x98] sm:$0xff] (!%p1049_p3) }
  0xa5   : > { %v367_v28 = vld [vmem:[%s306_s4] sm:$0xff] (!%p1049_p3)  ;;  %v1117_v29 = vpack.c.bf16 (!%p1049_p3), %v384_v25, %v382_v24  ;;  %v1119_v30 = vpack.c.bf16 (!%p1049_p3), %v389_v27, %v387_v26  ;;  %v386_v31 = vld [vmem:[#allocation16 + $0x80] sm:$0xff] (!%p1049_p3)  ;;  %v391_v33 = vld [vmem:[#allocation16 + $0xa8] sm:$0xff] (!%p1049_p3) }
  0xa6   : > { %369 = vst [vmem:[%s368_s14] sm:$0xff] (!%p1049_p3), %v367_v28  ;;  %v388_v32 = vld [vmem:[#allocation16 + $0x90] sm:$0xff] (!%p1049_p3)  ;;  %v393_v34 = vld [vmem:[#allocation16 + $0xb8] sm:$0xff] (!%p1049_p3)  ;;  %v390_v37 = vld [vmem:[#allocation16 + $0xa0] sm:$0xff] (!%p1049_p3) }
  0xa7   : > { %1110 = vmatpush1.bf16.msra.mxu0 %v1109_v16  ;;  %v1121_v35 = vpack.c.bf16 %v388_v32, %v386_v31  ;;  %v1123_v36 = vpack.c.bf16 %v393_v34, %v391_v33  ;;  %v392_v38 = vld [vmem:[#allocation16 + $0xb0] sm:$0xff]  ;;  %v395_v39 = vld [vmem:[#allocation16 + $0xc8] sm:$0xff]  ;;  %v397_v40 = vld [vmem:[#allocation16 + $0xd8] sm:$0xff]  ;;  %v1525_v60 = vmov (!%p1052_p5), 1966171168   ;;  %v503_v62 = vlaneseq (!%p1052_p5) }
  0xa8   : > { %1112 = vmatprep.subr.bf16.mxu0 %v1111_v17  ;;  %v1125_v41 = vpack.c.bf16 %v392_v38, %v390_v37  ;;  %v1127_v42 = vpack.c.bf16 %v397_v40, %v395_v39  ;;  %v394_v43 = vld [vmem:[#allocation16 + $0xc0] sm:$0xff]  ;;  %v396_v44 = vld [vmem:[#allocation16 + $0xd0] sm:$0xff]  ;;  %v399_v45 = vld [vmem:[#allocation16 + $0xe8] sm:$0xff]  ;;  %v501_v61 = vunpack.c.l.s4 (!%p1052_p5), %v1525_v60 }
  0xa9   : > { %v401_v46 = vld [vmem:[#allocation16 + $0xf8] sm:$0xff]  ;;  %v1129_v47 = vpack.c.bf16 %v396_v44, %v394_v43  ;;  %v398_v49 = vld [vmem:[#allocation16 + $0xe0] sm:$0xff]  ;;  %v400_v50 = vld [vmem:[#allocation16 + $0xf0] sm:$0xff]  ;;  %v504_v8 = vshrl.u32 (!%p1052_p5), %v503_v62, 7  ;;  %vm518_vm1 = vcmp.lt.s32.totalorder (!%p1052_p5), %v503_v62, 256 }
  0xaa   : > { %v1131_v48 = vpack.c.bf16 %v401_v46, %v399_v45  ;;  %v1133_v51 = vpack.c.bf16 %v400_v50, %v398_v49  ;;  %v502_v7 = vunpack.c.0.s8 (!%p1052_p5), %v501_v61  ;;  %v484_v24 = vld [vmem:[#allocation5] sm:$0x3] (!%p1052_p5) }
  0xab   : > { %1114 = vmatpush1.bf16.msra.mxu0 %v1113_v22 }
  0xac   : > { %1116 = vmatprep.subr.bf16.mxu0 %v1115_v23  ;;  %v505_v17 = vsub.s32 (!%p1052_p5), %v502_v7, %v504_v8 }
  0xaf   : > { %1118 = vmatpush1.bf16.msra.mxu0 %v1117_v29  ;;  %v521_v29 = vld [vmem:[#allocation6] sm:$0x3] (!%p1052_p5) }
  0xb0   : > { %1120 = vmatprep.subr.bf16.mxu0 %v1119_v30 }
  0xb3   : > { %1122 = vmatpush1.bf16.msra.mxu0 %v1121_v35 }
  0xb4   : > { %1124 = vmatprep.subr.bf16.mxu0 %v1123_v36 }
  0xb7   : > { %1126 = vmatpush1.bf16.msra.mxu0 %v1125_v41 }
  0xb8   : > { %1128 = vmatprep.subr.bf16.mxu0 %v1127_v42 }
  0xbb   : > { %1130 = vmatpush1.bf16.msra.mxu0 %v1129_v47 }
  0xbc   : > { %1132 = vmatprep.subr.bf16.mxu0 %v1131_v48 }
  0xbf   : > { %1134 = vmatpush1.bf16.msra.mxu0 %v1133_v51 }
  0xc2   : > { %467 = vmatmul.mubr.f32.vlgmr.msra.gmra.mrb[0].mxu0 %v367_v28 }
 0x191   : > { %483 = sbr.rel (%p1052_p5) target bundleno = 430 (0x1ae), region = 72 }
 0x195   : > { %v468_v52 = vpop.f32.mrb[0].mxu0 }
 0x196   : > { %478 = vst [vmem:[%s477_s10] sm:$0xff] %v468_v52  ;;  %v470_v53 = vpop.f32.mrb[1].mxu0  ;;  %v485_v54 = vrot.slane (!%p1052_p5), %v468_v52, 4  ;;  %v522_v56 = vmul.f32 (!%p1052_p5), %v468_v52, %v468_v52 }
 0x197   : > { %479 = vst [vmem:[%s477_s10 + $0x8] sm:$0xff] %v470_v53  ;;  %v491_v55 = vrot.slane (!%p1052_p5), %v470_v53, 4  ;;  %v523_v57 = vmul.f32 (!%p1052_p5), %v470_v53, %v470_v53 }
 0x198   : > { %v486_v58 = vadd.f32 %v485_v54, %v468_v52  ;;  %v524_v63 = vrot.slane %v522_v56, 4 }
 0x199   : > { %v492_v59 = vadd.f32 %v491_v55, %v470_v53  ;;  %v530_v0 = vrot.slane %v523_v57, 4 }
 0x19a   : > { %v487_v1 = vrot.slane %v486_v58, 2  ;;  %v525_v3 = vadd.f32 %v524_v63, %v522_v56 }
 0x19b   : > { %v493_v2 = vrot.slane %v492_v59, 2  ;;  %v531_v4 = vadd.f32 %v530_v0, %v523_v57 }
 0x19c   : > { %v488_v5 = vadd.f32 %v487_v1, %v486_v58  ;;  %v526_v9 = vrot.slane %v525_v3, 2 }
 0x19d   : > { %v494_v6 = vadd.f32 %v493_v2, %v492_v59  ;;  %v532_v10 = vrot.slane %v531_v4, 2 }
 0x19e   : > { %v489_v11 = vrot.slane %v488_v5, 1  ;;  %v527_v13 = vadd.f32 %v526_v9, %v525_v3 }
 0x19f   : > { %v495_v12 = vrot.slane %v494_v6, 1  ;;  %v533_v14 = vadd.f32 %v532_v10, %v531_v4 }
 0x1a0   : > { %v490_v15 = vadd.f32 %v489_v11, %v488_v5  ;;  %v528_v18 = vrot.slane %v527_v13, 1 }
 0x1a1   : > { %v496_v16 = vadd.f32 %v495_v12, %v494_v6  ;;  %v534_v19 = vrot.slane %v533_v14, 1 }
 0x1a2   : > { %v529_v21 = vadd.f32 %v528_v18, %v527_v13 }
 0x1a3   : > { %v499_v20 = vcombine.low %v490_v15, %v496_v16  ;;  %v535_v22 = vadd.f32 %v534_v19, %v533_v14 }
 0x1a5   : > { %v506_v23 = vrot.slane %v499_v20, %v505_v17  ;;  %v538_v25 = vcombine.low %v529_v21, %v535_v22 }
 0x1a7   : > { %v513_v26 = vrot.slane %v506_v23, %v505_v17  ;;  %v545_v27 = vrot.slane %v538_v25, %v505_v17 }
 0x1a9   : > { %v515_v28 = vadd.f32 %v513_v26, %v484_v24  ;;  %v552_v30 = vrot.slane %v545_v27, %v505_v17 }
 0x1ab   : > { %520 = vst.msk [vmem:[#allocation5] sm:$0x3] %vm518_vm1, %v515_v28  ;;  %v554_v31 = vadd.f32 %v552_v30, %v521_v29 }
 0x1ad   : > { %555 = vst.msk [vmem:[#allocation6] sm:$0x3] %vm518_vm1, %v554_v31 }
 0x1ae PF: > { %p1053_p7 = scmp.ne.s32.totalorder %s1498_s30, 2 }
 0x1af   : > { %v560_v32 = vlaneseq (!%p1053_p7)  ;;  %v562_v33 = vstv (!%p1053_p7), %s1797_s7  ;;  %v1526_v42 = vmov (!%p1053_p7), 1966171168  }
 0x1b0   : > { %559 = sbr.rel (%p1053_p7) target bundleno = 462 (0x1ce), region = 76  ;;  %v584_v43 = vunpack.c.l.s4 (!%p1053_p7), %v1526_v42 }
 0x1b1   : > { %v561_v34 = vshrl.u32 (!%p1053_p7), %v560_v32, 7  ;;  %vm601_vm3 = vcmp.lt.s32.totalorder (!%p1053_p7), %v560_v32, 256 }
 0x1b2   : > { %v585_v54 = vunpack.c.0.s8 (!%p1053_p7), %v584_v43  ;;  %v567_v7 = vld [vmem:[#allocation5] sm:$0x3] (!%p1053_p7) }
 0x1b3   : > { %v563_v35 = vadd.s32 (!%p1053_p7), %v562_v33, %v561_v34 }
 0x1b4   : > { %v588_v61 = vsub.s32 (!%p1053_p7), %v585_v54, %v561_v34  ;;  %v604_v10 = vld [vmem:[#allocation6] sm:$0x3] (!%p1053_p7) }
 0x1b5   : > { %vm564_vm2 = vcmp.lt.s32.totalorder (!%p1053_p7), %v563_v35, 20 }
 0x1b6   : > { %v565_v36 = vsel (!%p1053_p7), %vm564_vm2, %v468_v52, 0.0  ;;  %v566_v37 = vsel (!%p1053_p7), %vm564_vm2, %v470_v53, 0.0 }
 0x1b7   : > { %v568_v38 = vrot.slane %v565_v36, 4  ;;  %v574_v39 = vrot.slane %v566_v37, 4  ;;  %v605_v40 = vmul.f32 %v565_v36, %v565_v36  ;;  %v606_v41 = vmul.f32 %v566_v37, %v566_v37 }
 0x1b9   : > { %v569_v44 = vadd.f32 %v568_v38, %v565_v36  ;;  %v575_v45 = vadd.f32 %v574_v39, %v566_v37  ;;  %v607_v46 = vrot.slane %v605_v40, 4  ;;  %v613_v47 = vrot.slane %v606_v41, 4 }
 0x1bb   : > { %v570_v48 = vrot.slane %v569_v44, 2  ;;  %v576_v49 = vrot.slane %v575_v45, 2  ;;  %v608_v50 = vadd.f32 %v607_v46, %v605_v40  ;;  %v614_v51 = vadd.f32 %v613_v47, %v606_v41 }
 0x1bd   : > { %v571_v55 = vadd.f32 %v570_v48, %v569_v44  ;;  %v577_v56 = vadd.f32 %v576_v49, %v575_v45  ;;  %v609_v57 = vrot.slane %v608_v50, 2  ;;  %v615_v52 = vrot.slane %v614_v51, 2 }
 0x1bf   : > { %v572_v53 = vrot.slane %v571_v55, 1  ;;  %v578_v58 = vrot.slane %v577_v56, 1  ;;  %v610_v59 = vadd.f32 %v609_v57, %v608_v50  ;;  %v616_v60 = vadd.f32 %v615_v52, %v614_v51 }
 0x1c1   : > { %v573_v62 = vadd.f32 %v572_v53, %v571_v55  ;;  %v579_v63 = vadd.f32 %v578_v58, %v577_v56  ;;  %v611_v0 = vrot.slane %v610_v59, 1  ;;  %v617_v1 = vrot.slane %v616_v60, 1 }
 0x1c3   : > { %v582_v2 = vcombine.low %v573_v62, %v579_v63  ;;  %v612_v3 = vadd.f32 %v611_v0, %v610_v59  ;;  %v618_v4 = vadd.f32 %v617_v1, %v616_v60 }
 0x1c5   : > { %v589_v5 = vrot.slane %v582_v2, %v588_v61  ;;  %v621_v6 = vcombine.low %v612_v3, %v618_v4 }
 0x1c7   : > { %v596_v8 = vrot.slane %v589_v5, %v588_v61  ;;  %v628_v9 = vrot.slane %v621_v6, %v588_v61 }
 0x1c9   : > { %v598_v11 = vadd.f32 %v596_v8, %v567_v7  ;;  %v635_v12 = vrot.slane %v628_v9, %v588_v61 }
 0x1cb   : > { %603 = vst.msk [vmem:[#allocation5] sm:$0x3] %vm601_vm3, %v598_v11  ;;  %v637_v13 = vadd.f32 %v635_v12, %v604_v10 }
 0x1cd   : > { %638 = vst.msk [vmem:[#allocation6] sm:$0x3] %vm601_vm3, %v637_v13 }
 0x1ce PF: > { %p639_p8 = scmp.eq.s32.totalorder %s1502_s8, 1 }
 0x1d0   : > { %p640_p12 = pnand %p639_p8, %p351_p13 }
 0x1d1   : > { %v655_v22 = vlaneseq (!%p640_p12)  ;;  %v651_v23 = vld [vmem:[%s1922_s2] sm:$0x3] (!%p640_p12)  ;;  %s1964_s5 = sld [smem:[#allocation29_spill]] (!%p640_p12) }
 0x1d2   : > { %643 = sbr.rel (%p640_p12) target bundleno = 495 (0x1ef), region = 80  ;;  %v644_v14 = vld [vmem:[#allocation5] sm:$0x3] (!%p640_p12) }
 0x1d3   : > { %v645_v16 = vmul.f32 (!%p640_p12), 0.05, %v644_v14  ;;  %vm657_vm4 = vcmp.lt.s32.totalorder (!%p640_p12), %v655_v22, 256 }
 0x1d4   : > { %v646_v15 = vld [vmem:[#allocation6] sm:$0x3] (!%p640_p12) }
 0x1d5   : > { %v647_v17 = vmul.f32 (!%p640_p12), 0.05, %v646_v15  ;;  %v648_v18 = vmul.f32 (!%p640_p12), %v645_v16, %v645_v16 }
 0x1d7   : > { %v649_v19 = vsub.f32 (!%p640_p12), %v647_v17, %v648_v18  ;;  %v660_v26 = vld [vmem:[%s1964_s5] sm:$0x3] (!%p640_p12) }
 0x1d9   : > { %v650_v20 = vmax.f32 %v649_v19, 0.0 }
 0x1db   : > { %v652_v21 = vadd.f32 1e-05, %v650_v20 }
 0x1dd   : > { %1298 = vrsqrt.f32 %v652_v21 }
 0x1e7   : > { %v1299_v24 = vpop.eup %1298 }
 0x1e8   : > { %v654_v25 = vmul.f32 %v1299_v24, %v651_v23 }
 0x1ea   : > { %659 = vst.msk [vmem:[#allocation9] sm:$0x3] %vm657_vm4, %v654_v25  ;;  %v661_v27 = vmul.f32 %v654_v25, %v645_v16 }
 0x1ec   : > { %v662_v28 = vsub.f32 %v660_v26, %v661_v27 }
 0x1ee   : > { %663 = vst.msk [vmem:[#allocation10] sm:$0x3] %vm657_vm4, %v662_v28 }
 0x1ef PF: > { %p1054_p0 = scmp.ne.s32.totalorder %s1502_s8, 1 }
 0x1f0   : > { %v720_v29 = vld [vmem:[#allocation18 + $0x80] sm:$0xff] (!%p1054_p0)  ;;  %v721_v30 = vld [vmem:[#allocation18 + $0x88] sm:$0xff] (!%p1054_p0)  ;;  %v676_v32 = vlaneseq (!%p1054_p0)  ;;  %v722_v35 = vld [vmem:[#allocation18 + $0x90] sm:$0xff] (!%p1054_p0)  ;;  %s667_s6 = sshra.s32 (!%p1054_p0), %s1797_s7, 3  ;;  %s806_s1 = scalar_lea.vmem (!%p1054_p0), [#allocation4], %s1797_s7 }
 0x1f1   : > { %666 = sbr.rel (%p1054_p0) target bundleno = 786 (0x312), region = 84  ;;  %v704_v31 = vld [vmem:[#allocation18] sm:$0xff] (!%p1054_p0)  ;;  %v1135_v33 = vpack.c.bf16 (!%p1054_p0), %v721_v30, %v720_v29  ;;  %v705_v34 = vld [vmem:[#allocation18 + $0x8] sm:$0xff] (!%p1054_p0)  ;;  %v723_v36 = vld [vmem:[#allocation18 + $0x98] sm:$0xff] (!%p1054_p0)  ;;  %s1829_s19 = sshll.u32 (!%p1054_p0), %s667_s6, 4 }
 0x1f2   : > { %v1137_v37 = vpack.c.bf16 (!%p1054_p0), %v705_v34, %v704_v31  ;;  %v1139_v38 = vpack.c.bf16 (!%p1054_p0), %v723_v36, %v722_v35  ;;  %v706_v39 = vld [vmem:[#allocation18 + $0x10] sm:$0xff] (!%p1054_p0)  ;;  %v707_v40 = vld [vmem:[#allocation18 + $0x18] sm:$0xff] (!%p1054_p0)  ;;  %v724_v41 = vld [vmem:[#allocation18 + $0xa0] sm:$0xff] (!%p1054_p0)  ;;  %v1827_v44 = vshrl.u32 (!%p1054_p0), %v676_v32, 7  ;;  %s671_s3 = scalar_lea.vmem (!%p1054_p0), [#allocation3], %s1829_s19  ;;  %p1057_p4 = scmp.ge.s32.totalorder (!%p1054_p0), %s1498_s30, 2 }
 0x1f3   : > { %1136 = vmatprep.subr.bf16.mxu0 (!%p1054_p0), %v1135_v33  ;;  %v725_v42 = vld [vmem:[#allocation18 + $0xa8] sm:$0xff] (!%p1054_p0)  ;;  %v1141_v43 = vpack.c.bf16 (!%p1054_p0), %v707_v40, %v706_v39  ;;  %v708_v46 = vld [vmem:[#allocation18 + $0x20] sm:$0xff] (!%p1054_p0)  ;;  %v726_v48 = vld [vmem:[#allocation18 + $0xb0] sm:$0xff] (!%p1054_p0) }
 0x1f4   : > { %1138 = vmatpush3.bf16.msra.mxu0 (!%p1054_p0), %v1137_v37  ;;  %v1143_v45 = vpack.c.bf16 (!%p1054_p0), %v725_v42, %v724_v41  ;;  %v709_v47 = vld [vmem:[#allocation18 + $0x28] sm:$0xff] (!%p1054_p0)  ;;  %v727_v49 = vld [vmem:[#allocation18 + $0xb8] sm:$0xff] (!%p1054_p0)  ;;  %v682_v51 = vsub.s32 (!%p1054_p0), 1, %v1827_v44  ;;  %v710_v55 = vld [vmem:[#allocation18 + $0x30] sm:$0xff] (!%p1054_p0)  ;;  %v678_v5 = vsub.s32 (!%p1054_p0), 0, %v1827_v44 }
 0x1f5   : > { %1140 = vmatprep.subr.bf16.mxu0 (!%p1054_p0), %v1139_v38  ;;  %v1145_v50 = vpack.c.bf16 (!%p1054_p0), %v709_v47, %v708_v46  ;;  %v1147_v54 = vpack.c.bf16 (!%p1054_p0), %v727_v49, %v726_v48  ;;  %v711_v56 = vld [vmem:[#allocation18 + $0x38] sm:$0xff] (!%p1054_p0)  ;;  %v728_v57 = vld [vmem:[#allocation18 + $0xc0] sm:$0xff] (!%p1054_p0)  ;;  %v729_v52 = vld [vmem:[#allocation18 + $0xc8] sm:$0xff] (!%p1054_p0) }
 0x1f6   : > { %v673_v53 = vld [vmem:[%s671_s3 + $0x8] sm:$0xff] (!%p1054_p0)  ;;  %v674_v58 = vld [vmem:[#allocation9] sm:$0x3] (!%p1054_p0)  ;;  %v1149_v60 = vpack.c.bf16 (!%p1054_p0), %v711_v56, %v710_v55  ;;  %v1151_v63 = vpack.c.bf16 (!%p1054_p0), %v729_v52, %v728_v57  ;;  %v712_v0 = vld [vmem:[#allocation18 + $0x40] sm:$0xff] (!%p1054_p0) }
 0x1f7   : > { %v688_v59 = vld [vmem:[#allocation10] sm:$0x3] (!%p1054_p0)  ;;  %v683_v61 = vrot.slane (!%p1054_p0), %v674_v58, %v682_v51  ;;  %v730_v2 = vld [vmem:[#allocation18 + $0xd0] sm:$0xff] (!%p1054_p0)  ;;  %v731_v3 = vld [vmem:[#allocation18 + $0xd8] sm:$0xff] (!%p1054_p0)  ;;  %v679_v14 = vrot.slane (!%p1054_p0), %v674_v58, %v678_v5 }
 0x1f8   : > { %1142 = vmatpush3.bf16.msra.mxu0 %v1141_v43  ;;  %v697_v62 = vrot.slane %v688_v59, %v682_v51  ;;  %v713_v1 = vld [vmem:[#allocation18 + $0x48] sm:$0xff]  ;;  %v1155_v8 = vpack.c.bf16 %v731_v3, %v730_v2  ;;  %v714_v9 = vld [vmem:[#allocation18 + $0x50] sm:$0xff]  ;;  %v715_v10 = vld [vmem:[#allocation18 + $0x58] sm:$0xff]  ;;  %v693_v22 = vrot.slane %v688_v59, %v678_v5 }
 0x1f9   : > { %1144 = vmatprep.subr.bf16.mxu0 %v1143_v45  ;;  %v687_v4 = vmul.f32 %v683_v61, %v673_v53  ;;  %v1153_v6 = vpack.c.bf16 %v713_v1, %v712_v0  ;;  %v732_v11 = vld [vmem:[#allocation18 + $0xe0] sm:$0xff]  ;;  %v733_v12 = vld [vmem:[#allocation18 + $0xe8] sm:$0xff]  ;;  %v1157_v15 = vpack.c.bf16 %v715_v10, %v714_v9  ;;  %v734_v20 = vld [vmem:[#allocation18 + $0xf0] sm:$0xff] }
 0x1fa   : > { %v672_v16 = vld [vmem:[%s671_s3] sm:$0xff]  ;;  %v1159_v17 = vpack.c.bf16 %v733_v12, %v732_v11  ;;  %v735_v21 = vld [vmem:[#allocation18 + $0xf8] sm:$0xff]  ;;  %v718_v26 = vld [vmem:[#allocation18 + $0x70] sm:$0xff] }
 0x1fb   : > { %v701_v7 = vadd.f32 %v697_v62, %v687_v4  ;;  %v716_v18 = vld [vmem:[#allocation18 + $0x60] sm:$0xff]  ;;  %v717_v19 = vld [vmem:[#allocation18 + $0x68] sm:$0xff]  ;;  %v686_v23 = vmul.f32 %v679_v14, %v672_v16  ;;  %v1163_v25 = vpack.c.bf16 %v735_v21, %v734_v20  ;;  %v719_v27 = vld [vmem:[#allocation18 + $0x78] sm:$0xff] }
 0x1fc   : > { %1146 = vmatpush3.bf16.msra.mxu0 %v1145_v50  ;;  %v1161_v24 = vpack.c.bf16 %v717_v19, %v716_v18  ;;  %v1165_v29 = vpack.c.bf16 %v719_v27, %v718_v26  ;;  %v812_v45 = vld [vmem:[#allocation7] sm:$0x1] (!%p1057_p4)  ;;  %v821_v48 = vld [vmem:[#allocation8] sm:$0x1] (!%p1057_p4) }
 0x1fd   : > { %1148 = vmatprep.subr.bf16.mxu0 %v1147_v54  ;;  %v703_v13 = vmax.f32 %v701_v7, 0.0  ;;  %v700_v28 = vadd.f32 %v693_v22, %v686_v23 }
 0x1ff   : > { %800 = vmatprep.mubr.f32.mxu0 %v703_v13  ;;  %v702_v30 = vmax.f32 %v700_v28, 0.0 }
 0x200   : > { %1150 = vmatpush3.bf16.msra.mxu0 %v1149_v60 }
 0x201   : > { %1152 = vmatprep.subr.bf16.mxu0 %v1151_v63 }
 0x204   : > { %1154 = vmatpush3.bf16.msra.mxu0 %v1153_v6 }
 0x205   : > { %1156 = vmatprep.subr.bf16.mxu0 %v1155_v8 }
 0x208   : > { %1158 = vmatpush3.bf16.msra.mxu0 %v1157_v15 }
 0x209   : > { %1160 = vmatprep.subr.bf16.mxu0 %v1159_v17 }
 0x20c   : > { %1162 = vmatpush3.bf16.msra.mxu0 %v1161_v24 }
 0x20d   : > { %1164 = vmatprep.subr.bf16.mxu0 %v1163_v25 }
 0x210   : > { %1166 = vmatpush3.bf16.msra.mxu0 %v1165_v29 }
 0x213   : > { %801 = vmatmul.mubr.f32.vlgmr.msra.gmra.mrb[0].mxu0 %v702_v30 }
 0x2e4   : > { %811 = sbr.rel (%p1057_p4) target bundleno = 763 (0x2fb), region = 88 }
 0x2e6   : > { %v1100_v31 = vpop.f32.mrb[0].mxu0 }
 0x2e7   : > { %v1101_v32 = vpop.f32.mrb[1].mxu0 }
 0x2e8   : > { %v1102_v33 = vadd.f32 %v1101_v32, %v1100_v31 }
 0x2ea   : > { %807 = vst [vmem:[%s806_s1] sm:$0xff] %v1102_v33  ;;  %v813_v34 = vrot.slane (!%p1057_p4), %v1102_v33, 4  ;;  %v822_v35 = vmul.f32 (!%p1057_p4), %v1102_v33, %v1102_v33 }
 0x2ec   : > { %v814_v36 = vadd.f32 %v1102_v33, %v813_v34  ;;  %v823_v37 = vrot.slane %v822_v35, 4 }
 0x2ee   : > { %v815_v38 = vrot.slane %v814_v36, 2  ;;  %v824_v39 = vadd.f32 %v823_v37, %v822_v35 }
 0x2f0   : > { %v816_v40 = vadd.f32 %v815_v38, %v814_v36  ;;  %v825_v41 = vrot.slane %v824_v39, 2 }
 0x2f2   : > { %v817_v42 = vrot.slane %v816_v40, 1  ;;  %v826_v43 = vadd.f32 %v825_v41, %v824_v39 }
 0x2f4   : > { %v818_v46 = vadd.f32 %v817_v42, %v816_v40  ;;  %v827_v47 = vrot.slane %v826_v43, 1 }
 0x2f6   : > { %v819_v49 = vadd.f32 %v818_v46, %v812_v45  ;;  %v828_v50 = vadd.f32 %v827_v47, %v826_v43 }
 0x2f8   : > { %820 = vst [vmem:[#allocation7] sm:$0x1] %v819_v49  ;;  %v829_v51 = vadd.f32 %v828_v50, %v821_v48 }
 0x2fa   : > { %830 = vst [vmem:[#allocation8] sm:$0x1] %v829_v51 }
 0x2fb PF: > { %p1058_p6 = scmp.ne.s32.totalorder %s1498_s30, 2 }
 0x2fc   : > { %v837_v54 = vstv (!%p1058_p6), %s1797_s7 }
 0x2fd   : > { %834 = sbr.rel (%p1058_p6) target bundleno = 786 (0x312), region = 92  ;;  %v838_v55 = vadd.s32 (!%p1058_p6), %v837_v54, %v1827_v44 }
 0x2ff   : > { %vm839_vm5 = vcmp.lt.s32.totalorder (!%p1058_p6), %v838_v55, 20  ;;  %v841_v1 = vld [vmem:[#allocation7] sm:$0x1] (!%p1058_p6) }
 0x300   : > { %v840_v56 = vsel (!%p1058_p6), %vm839_vm5, %v1102_v33, 0.0 }
 0x301   : > { %v842_v57 = vrot.slane (!%p1058_p6), %v840_v56, 4  ;;  %v851_v52 = vmul.f32 (!%p1058_p6), %v840_v56, %v840_v56  ;;  %v850_v4 = vld [vmem:[#allocation8] sm:$0x1] (!%p1058_p6) }
 0x303   : > { %v843_v53 = vadd.f32 (!%p1058_p6), %v842_v57, %v840_v56  ;;  %v852_v58 = vrot.slane (!%p1058_p6), %v851_v52, 4 }
 0x305   : > { %v844_v59 = vrot.slane %v843_v53, 2  ;;  %v853_v60 = vadd.f32 %v852_v58, %v851_v52 }
 0x307   : > { %v845_v61 = vadd.f32 %v844_v59, %v843_v53  ;;  %v854_v62 = vrot.slane %v853_v60, 2 }
 0x309   : > { %v846_v63 = vrot.slane %v845_v61, 1  ;;  %v855_v0 = vadd.f32 %v854_v62, %v853_v60 }
 0x30b   : > { %v847_v2 = vadd.f32 %v846_v63, %v845_v61  ;;  %v856_v3 = vrot.slane %v855_v0, 1 }
 0x30d   : > { %v848_v5 = vadd.f32 %v847_v2, %v841_v1  ;;  %v857_v6 = vadd.f32 %v856_v3, %v855_v0 }
 0x30f   : > { %849 = vst [vmem:[#allocation7] sm:$0x1] %v848_v5  ;;  %v858_v44 = vadd.f32 %v857_v6, %v850_v4 }
 0x311   : > { %859 = vst [vmem:[#allocation8] sm:$0x1] %v858_v44 }
 0x312 PF: > { %p860_p1 = scmp.eq.s32.totalorder %s1502_s8, 2 }
 0x314   : > { %p861_p2 = pnand %p860_p1, %p351_p13 }
 0x315   : > { %s1965_s24 = sld [smem:[#allocation31_spill]] (!%p861_p2)  ;;  %s1966_s21 = sld [smem:[#allocation32_spill]] (!%p861_p2) }
 0x316   : > { %864 = sbr.rel (%p861_p2) target bundleno = 819 (0x333), region = 96  ;;  %v865_v7 = vld [vmem:[#allocation7] sm:$0x1] (!%p861_p2) }
 0x317   : > { %v866_v9 = vmul.f32 (!%p861_p2), 0.05, %v865_v7 }
 0x318   : > { %v867_v8 = vld [vmem:[#allocation8] sm:$0x1] (!%p861_p2) }
 0x319   : > { %v868_v10 = vmul.f32 (!%p861_p2), 0.05, %v867_v8  ;;  %v869_v11 = vmul.f32 (!%p861_p2), %v866_v9, %v866_v9 }
 0x31b   : > { %v870_v12 = vsub.f32 (!%p861_p2), %v868_v10, %v869_v11  ;;  %v872_v15 = vld [vmem:[%s1965_s24] sm:$0x1] (!%p861_p2) }
 0x31c   : > { %v877_v18 = vld [vmem:[%s1966_s21] sm:$0x1] (!%p861_p2) }
 0x31d   : > { %v871_v13 = vmax.f32 %v870_v12, 0.0 }
 0x31f   : > { %v873_v14 = vadd.f32 1e-05, %v871_v13 }
 0x321   : > { %1300 = vrsqrt.f32 %v873_v14 }
 0x32b   : > { %v1301_v16 = vpop.eup %1300 }
 0x32c   : > { %v875_v17 = vmul.f32 %v1301_v16, %v872_v15 }
 0x32e   : > { %876 = vst [vmem:[#allocation11] sm:$0x1] %v875_v17  ;;  %v878_v19 = vmul.f32 %v875_v17, %v866_v9 }
 0x330   : > { %v879_v20 = vsub.f32 %v877_v18, %v878_v19 }
 0x332   : > { %880 = vst [vmem:[#allocation12] sm:$0x1] %v879_v20 }
 0x333 PF: > { %p1059_p10 = scmp.ne.s32.totalorder %s1502_s8, 2 }
 0x334   : > { %s884_s23 = scalar_lea.vmem (!%p1059_p10), [#allocation4], %s1797_s7  ;;  %s903_s13 = scalar_lea.vmem (!%p1059_p10), [#allocation2], %s1797_s7 }
 0x335   : > { %883 = sbr.rel (%p1059_p10) target bundleno = 833 (0x341), region = 100  ;;  %v1060_v21 = vld [vmem:[#allocation11] ss:$0 sm:$0xff] (!%p1059_p10)  ;;  %v885_v22 = vld [vmem:[%s884_s23] sm:$0xff] (!%p1059_p10) }
 0x336   : > { %v893_v24 = vmul.f32 (!%p1059_p10), %v1060_v21, %v885_v22  ;;  %v904_v26 = vld [vmem:[%s903_s13] sm:$0xff] (!%p1059_p10) }
 0x339   : > { %v1061_v23 = vld [vmem:[#allocation12] ss:$0 sm:$0xff] (!%p1059_p10) }
 0x33a   : > { %v901_v25 = vadd.f32 (!%p1059_p10), %v1061_v23, %v893_v24 }
 0x33c   : > { %v902_v27 = vmax.f32 %v901_v25, 0.0 }
 0x33e   : > { %v905_v28 = vadd.f32 %v904_v26, %v902_v27 }
 0x340   : > { %906 = vst [vmem:[%s344_s15] sm:$0xff] %v905_v28 }
 0x341 PF: > { %s1967_s22 = sld [smem:[#allocation25_spill]]  ;;  %s923_s5 = sshll.u32 %s344_s15, 4  ;;  %s1860_s5 = int_to_ptr.vmem [resolvable:$true] %s923_s5 }
 0x342   : > { %s1991_s30 = smov (!%p860_p1, %s1498_s30), 0  ;;  %s1968_s3 = sld [smem:[#allocation33_spill]] }
 0x343   : > { %s1063_s7 = sshll.u32 %s1991_s30, 7  ;;  %s908_s4 = scalar_lea.sflag [#allocation15], %s342_s18 }
 0x344   : > { %s1388_s20 = scalar_lea.vmem %s1860_s5, 128  ;;  %s1527_s15 = smov [#allocation19]  }
 0x345   : > { %p1389_p9 = scmp.ne.s32.totalorder %s1860_s5, %s1388_s20  ;;  %s1392_s8 = sshll.u32 %s1527_s15, 4  ;;  %s1393_s8 = int_to_ptr.vmem [resolvable:$false] %s1392_s8 }
 0x346   : > { %s1394_s14 = scalar_lea.vmem %s1393_s8, 256  ;;  %p1395_p5 = scmp.lt.s32.totalorder %s1860_s5, %s1393_s8 }
 0x347   : > { %p1969_p13 = scmp.ne.s32.totalorder %s1967_s22, 0  ;;  %p1396_p7 = scmp.lt.s32.totalorder %s1394_s14, %s1388_s20 }
 0x348   : > { %s921_s1 = scalar_lea.hbm %s1968_s3, %s1063_s7 }
 0x349   : > { %p1390_p11 = pnand %p1389_p9, %p1969_p13  ;;  %p1397_p8 = por %p1396_p7, %p1395_p5 }
 0x34b   : > { %p1391_p3 = pneg %p1390_p11 }
 0x34d   : > { %p1398_p12 = pnand %p1397_p8, %p1391_p3 }
 0x34f   : > { %1401 = shalt.err (!%p1398_p12)
}
 0x350   : > { %s1402_s30 = scalar_lea.hbm %s921_s1, 128  ;;  %s1406_s12 = scalar_lea.hbm %s1968_s3, 384 }
 0x351   : > { %p1403_p0 = scmp.ne.s32.totalorder %s921_s1, %s1402_s30  ;;  %p1407_p1 = scmp.lt.u32.totalorder %s921_s1, %s1968_s3 }
 0x352   : > { %p1408_p2 = scmp.lt.u32.totalorder %s1406_s12, %s1402_s30  ;;  %p1410_p9 = scmp.lt.u32.totalorder %s1402_s30, %s921_s1 }
 0x353   : > { %p1404_p4 = pnand %p1403_p0, %p1969_p13 }
 0x354   : > { %p1409_p10 = por %p1408_p2, %p1407_p1 }
 0x355   : > { %p1405_p6 = pneg %p1404_p4 }
 0x356   : > { %p1411_p11 = por %p1410_p9, %p1409_p10 }
 0x358   : > { %p1412_p3 = pnand %p1411_p11, %p1405_p6 }
 0x35a   : > { %1415 = shalt.err (!%p1412_p3)
}
 0x35b   : > { %1177 = dma.vmem_to_hbm [thread:$0]  (%p1969_p13), %s1860_s5, 128, %s921_s1, %s908_s4  }
 0x35c PF: > { %s1970_s23 = sld [smem:[#allocation23_spill]]  ;;  %s1971_s13 = sld [smem:[#allocation26_spill]] }
 0x35d   : > { %p1199_p5 = scmp.ge.s32.totalorder %s1514_s11, 2 }
 0x362   : > { %s935_s7 = sand.u32 1, %s1970_s23   ;;  %p1972_p7 = scmp.ne.s32.totalorder %s1971_s13, 0 }
 0x363   : > { %s936_s6 = scalar_lea.sflag [#allocation15], %s935_s7 }
 0x364   : > { %p1191_p8 = pnand %p1199_p5, %p1972_p7 }
 0x366   : > { %1469 = dma.done.wait (!%p1191_p8), %s936_s6, 128  }
 0x367   : > { %1471 = vsyncadd (!%p1191_p8), %s936_s6, 4294967168  ;;  %s24_s11 = sadd.s32 1, %s1514_s11   ;;  %s1973_s8 = sld [smem:[#allocation24_spill]] }
 0x368   : > { %p21_p12 = scmp.ge.s32.totalorder %s24_s11, 11   ;;  %s1974_s22 = smov %s1985_s27 }
 0x369   : > { %s1975_s10 = sld [smem:[#allocation27_spill]]  ;;  %s1976_s24 = smov %s1478_s25 }
 0x36a   : > { %s1977_s25 = smov %s1482_s26  ;;  %s1978_s26 = smov %s1739_s17 }
 0x36b   : > { %s1979_s27 = smov %s1490_s28  ;;  %s1980_s28 = smov %s1494_s29 }
 0x36c   : > { %s1981_s29 = smov %s1736_s16  ;;  %s1982_s30 = smov %s1506_s9 }
 0x36d   : > { %s1983_s9 = smov %s1974_s22  ;;  %23 = sbr.rel (!%p21_p12) target bundleno = 17 (0x11), region = 147 }
 0x374   :  { %941 = vsyncpa [#allocation14], 1 }
 0x375   :  { %943 = vsyncpa [#allocation14 + $0x1], 1 }
 0x376   :  { %944 = vsyncpa [#allocation17], 1 }
 0x377   :  { %945 = vsyncpa [#allocation15], 1 }
 0x378   :  { %947 = vsyncpa [#allocation15 + $0x1], 1 }

</bundles_post_ra>
